<compile_context>
chip_gen: v6e
topology: v6e:2x2x1
jax: 0.10.0
libtpu: 0.0.40
codegen_flags: <defaults>
</compile_context>

<pallas_src>
import functools

import jax
import jax.numpy as jnp
from jax.experimental import pallas as pl
from jax.experimental.pallas import tpu as pltpu

# -------------------------------------------------------------------- config
INPUT_CHANNELS = 3
OUTPUT_CHANNELS = 3
FILTERS_DOWN = [8, 16]
FILTERS_UP = [8, 16]          # NOTE: FILTERS_UP[-1] must equal FILTERS_SKIP[-1]
FILTERS_SKIP = [4, 16]
KS_DOWN = [3, 3]
KS_UP = [3, 3]
KS_SKIP = [1, 1]
NUM_LEVELS = len(FILTERS_DOWN)
LEAKY_SLOPE = 0.2
BN_EPS = 1e-5

LANE = 128                    # TPU lane width
MAX_TILE_M = 1024             # lanes per grid tile (multiple of 128)
VMEM_LIMIT = 32 * 1024 * 1024 # safe on v5e/v6e (128 MiB) and v7x (64 MiB) with headroom


def _cparams():
    return pltpu.CompilerParams(dimension_semantics=("parallel",),
                                vmem_limit_bytes=VMEM_LIMIT)


def _pad_cols(M):
    """Padded spatial length so it tiles into MAX_TILE_M-lane blocks."""
    Mp = -(-M // LANE) * LANE
    tile = min(Mp, MAX_TILE_M)
    return -(-Mp // tile) * tile


def _tile(Mp):
    t = min(Mp, MAX_TILE_M)
    return t, Mp // t


# ------------------------------------------------------------- Pallas kernels
def _conv_stats_kernel(w_ref, p_ref, o_ref, s_ref, q_ref):
    """y = W @ patches (bf16 in, f32 out) + per-tile BN partial sums."""
    acc = jnp.dot(w_ref[...], p_ref[...], preferred_element_type=jnp.float32)
    o_ref[...] = acc
    s_ref[...] = jnp.broadcast_to(jnp.sum(acc, axis=1, keepdims=True), s_ref.shape)
    q_ref[...] = jnp.broadcast_to(jnp.sum(acc * acc, axis=1, keepdims=True), q_ref.shape)


def _conv_stats(wmat, patches):
    """wmat: (Cout,K) bf16, patches: (K,Mp) bf16, zero-padded columns.

    Returns (y (Cout,Mp) f32, sum (Cout,), sumsq (Cout,))."""
    K, Mp = patches.shape
    Cout = wmat.shape[0]
    tile, T = _tile(Mp)
    y, ps, pq = pl.pallas_call(
        _conv_stats_kernel,
        out_shape=(jax.ShapeDtypeStruct((Cout, Mp), jnp.float32),
                   jax.ShapeDtypeStruct((Cout, T * LANE), jnp.float32),
                   jax.ShapeDtypeStruct((Cout, T * LANE), jnp.float32)),
        grid=(T,),
        in_specs=[pl.BlockSpec((Cout, K), lambda i: (0, 0)),
                  pl.BlockSpec((K, tile), lambda i: (0, i))],
        out_specs=(pl.BlockSpec((Cout, tile), lambda i: (0, i)),
                   pl.BlockSpec((Cout, LANE), lambda i: (0, i)),
                   pl.BlockSpec((Cout, LANE), lambda i: (0, i))),
        compiler_params=_cparams(),
    )(wmat, patches)
    s = ps.reshape(Cout, T, LANE)[:, :, 0].sum(axis=1)
    q = pq.reshape(Cout, T, LANE)[:, :, 0].sum(axis=1)
    return y, s, q


def _scale_shift_act_kernel(x_ref, s_ref, b_ref, o_ref, *, slope):
    y = x_ref[...] * s_ref[...] + b_ref[...]
    o_ref[...] = jnp.where(y >= 0, y, slope * y)


def _scale_shift_act(y, scale, shift, slope):
    """y: (C,Mp) f32, scale/shift: (C,1) f32; fused BN apply + LeakyReLU."""
    C, Mp = y.shape
    tile, T = _tile(Mp)
    return pl.pallas_call(
        functools.partial(_scale_shift_act_kernel, slope=slope),
        out_shape=jax.ShapeDtypeStruct((C, Mp), jnp.float32),
        grid=(T,),
        in_specs=[pl.BlockSpec((C, tile), lambda i: (0, i)),
                  pl.BlockSpec((C, 1), lambda i: (0, 0)),
                  pl.BlockSpec((C, 1), lambda i: (0, 0))],
        out_specs=pl.BlockSpec((C, tile), lambda i: (0, i)),
        compiler_params=_cparams(),
    )(y, scale, shift)


def _stats_kernel(x_ref, s_ref, q_ref):
    x = x_ref[...]
    s_ref[...] = jnp.broadcast_to(jnp.sum(x, axis=1, keepdims=True), s_ref.shape)
    q_ref[...] = jnp.broadcast_to(jnp.sum(x * x, axis=1, keepdims=True), q_ref.shape)


def _stats(x2):
    """x2: (C,Mp) f32 zero-padded. Returns per-channel (sum, sumsq)."""
    C, Mp = x2.shape
    tile, T = _tile(Mp)
    ps, pq = pl.pallas_call(
        _stats_kernel,
        out_shape=(jax.ShapeDtypeStruct((C, T * LANE), jnp.float32),
                   jax.ShapeDtypeStruct((C, T * LANE), jnp.float32)),
        grid=(T,),
        in_specs=[pl.BlockSpec((C, tile), lambda i: (0, i))],
        out_specs=(pl.BlockSpec((C, LANE), lambda i: (0, i)),
                   pl.BlockSpec((C, LANE), lambda i: (0, i))),
        compiler_params=_cparams(),
    )(x2)
    s = ps.reshape(C, T, LANE)[:, :, 0].sum(axis=1)
    q = pq.reshape(C, T, LANE)[:, :, 0].sum(axis=1)
    return s, q


def _conv_bias_sigmoid_kernel(w_ref, p_ref, b_ref, o_ref):
    acc = jnp.dot(w_ref[...], p_ref[...], preferred_element_type=jnp.float32)
    o_ref[...] = jax.nn.sigmoid(acc + b_ref[...])


def _conv_bias_sigmoid(x2, wmat, bias):
    """Fused final 1x1 conv + bias + sigmoid. x2: (Cin,Mp) bf16, wmat: (Cout,Cin) bf16."""
    K, Mp = x2.shape
    Cout = wmat.shape[0]
    tile, T = _tile(Mp)
    return pl.pallas_call(
        _conv_bias_sigmoid_kernel,
        out_shape=jax.ShapeDtypeStruct((Cout, Mp), jnp.float32),
        grid=(T,),
        in_specs=[pl.BlockSpec((Cout, K), lambda i: (0, 0)),
                  pl.BlockSpec((K, tile), lambda i: (0, i)),
                  pl.BlockSpec((Cout, 1), lambda i: (0, 0))],
        out_specs=pl.BlockSpec((Cout, tile), lambda i: (0, i)),
        compiler_params=_cparams(),
    )(wmat, x2, bias.reshape(Cout, 1))


# ---------------------------------------------------------------- JAX glue
def reflect_pad(a, p):
    # a: (C, N, H, W)
    if p == 0:
        return a
    return jnp.pad(a, ((0, 0), (0, 0), (p, p), (p, p)), mode="reflect")


def _to_2d_padded(a):
    """(C,N,H,W) -> ((C,Mp) zero-padded, real M)."""
    C, N, H, W = a.shape
    M = N * H * W
    Mp = _pad_cols(M)
    x2 = a.reshape(C, M)
    if Mp != M:
        x2 = jnp.pad(x2, ((0, 0), (0, Mp - M)))
    return x2, M


def _im2col(pieces, kh, kw, stride):
    """pieces: list of reflect-padded (C_i,N,Hp,Wp) activations (same N,Hp,Wp).

    Returns (patches (K,Mp) bf16 with zero-padded columns, M, Hout, Wout);
    row order is (tap major, concatenated channel minor) to match the weight layout."""
    _, N, Hp, Wp = pieces[0].shape
    Hout = (Hp - kh) // stride + 1
    Wout = (Wp - kw) // stride + 1
    M = N * Hout * Wout
    rows = []
    for ki in range(kh):
        for kj in range(kw):
            for a in pieces:
                v = a[:, :,
                      ki:ki + stride * (Hout - 1) + 1:stride,
                      kj:kj + stride * (Wout - 1) + 1:stride]
                rows.append(v.reshape(a.shape[0], M))
    patches = jnp.concatenate(rows, axis=0) if len(rows) > 1 else rows[0]
    Mp = _pad_cols(M)
    if Mp != M:
        patches = jnp.pad(patches, ((0, 0), (0, Mp - M)))
    return patches.astype(jnp.bfloat16), M, Hout, Wout


def upsample_nearest_2x(a):
    # nearest 2x as broadcast + reshape (no jnp.repeat), XLA fuses it downstream.
    C, N, H, W = a.shape
    a = jnp.broadcast_to(a[:, :, :, None, :, None], (C, N, H, 2, W, 2))
    return a.reshape(C, N, 2 * H, 2 * W)


# ---------------------------------------------------------------- fused layers
def conv_bn_act(pieces, w, gamma, beta, slope, stride):
    """reflect-pad + Conv2d (bias-free) + training-mode BatchNorm + LeakyReLU.

    pieces: list of (C_i,N,H,W) tensors, conceptually concatenated along channels.
    The conv bias is not applied: it is cancelled exactly by the batch-mean
    subtraction of the training-mode BatchNorm that follows."""
    Cout, Cin, kh, kw = w.shape
    pad = (kh - 1) // 2
    padded = [reflect_pad(a, pad) for a in pieces]
    patches, M, Hout, Wout = _im2col(padded, kh, kw, stride)
    wmat = jnp.transpose(w, (0, 2, 3, 1)).reshape(Cout, kh * kw * Cin).astype(jnp.bfloat16)

    y, s, q = _conv_stats(wmat, patches)          # conv + BN partial sums, one pass
    mean = s / M
    var = jnp.maximum(q / M - mean * mean, 0.0)   # guard against cancellation
    inv = gamma / jnp.sqrt(var + BN_EPS)
    shift = beta - mean * inv
    out = _scale_shift_act(y, inv.reshape(Cout, 1), shift.reshape(Cout, 1), slope)

    N = pieces[0].shape[1]
    return out[:, :M].reshape(Cout, N, Hout, Wout)


def downsample_module(x, p):
    # same BN module (bn_g/bn_b) applied after both convs, as in the PyTorch spec
    x = conv_bn_act([x], p["w1"], p["bn_g"], p["bn_b"], LEAKY_SLOPE, stride=2)
    x = conv_bn_act([x], p["w2"], p["bn_g"], p["bn_b"], LEAKY_SLOPE, stride=1)
    return x


def skip_connection(x, p):
    return conv_bn_act([x], p["w"], p["bn_g"], p["bn_b"], LEAKY_SLOPE, stride=1)


def upsample_module(pieces, p):
    # batch_norm_fixed is folded into cnn_1's weights:
    #   cnn_1(pad(g*(x-mu)/sigma + b)) = cnn_1'(pad(x)) + per-out-channel constant,
    # with w1'[:, c] *= g[c]/sigma[c].  The constant term (and cnn_1's bias) is
    # cancelled exactly by the following training-mode BatchNorm, so only the
    # per-channel scale is needed -> one tiny stats kernel, no extra activation pass.
    # The channel concat is never materialized: stats are computed per branch and
    # the conv reads both branches through the im2col row layout.
    scales = []
    for a in pieces:
        C, N, H, W = a.shape
        M = N * H * W
        x2, _ = _to_2d_padded(a)
        s, q = _stats(x2)
        mean = s / M
        var = jnp.maximum(q / M - mean * mean, 0.0)
        scales.append(1.0 / jnp.sqrt(var + BN_EPS))
    scale = jnp.concatenate(scales, axis=0) * p["bnf_g"]      # (Cin_total,)
    w1 = p["w1"] * scale.reshape(1, -1, 1, 1)
    # p["bnf_b"], p["b1"], p["b2"] are intentionally not applied (exactly cancel in BN).
    x = conv_bn_act(pieces, w1, p["bn_g"], p["bn_b"], LEAKY_SLOPE, stride=1)
    x = conv_bn_act([x], p["w2"], p["bn_g"], p["bn_b"], LEAKY_SLOPE, stride=1)
    return upsample_nearest_2x(x)


# ---------------------------------------------------------------- full network
def skip_architecture(x_nchw, params):
    # channel-major internal layout: (C, N, H, W) so N*H*W maps to the lane axis.
    x = jnp.transpose(x_nchw, (1, 0, 2, 3)).astype(jnp.float32)
    n = NUM_LEVELS
    s = []
    for i in range(n):
        x = downsample_module(x, params["down"][i])
        s.append(skip_connection(x, params["skip"][i]))
    for i in range(n):
        if i == 0:
            x = upsample_module([s[-1]], params["up"][i])
        else:
            x = upsample_module([x, s[n - i - 1]], params["up"][i])

    # fused last 1x1 conv + bias + sigmoid
    Cin, N, H, W = x.shape
    x2, M = _to_2d_padded(x)
    wmat = params["last_w"].reshape(OUTPUT_CHANNELS, Cin).astype(jnp.bfloat16)
    y = _conv_bias_sigmoid(x2.astype(jnp.bfloat16), wmat, params["last_b"])
    y = y[:, :M].reshape(OUTPUT_CHANNELS, N, H, W)
    return jnp.transpose(y, (1, 0, 2, 3))  # (C,N,H,W) -> NCHW


# ---------------------------------------------------------------- deterministic params
def build_params(key):
    n = NUM_LEVELS
    params = {"down": [], "skip": [], "up": []}
    key_holder = [key]

    def nxt():
        key_holder[0], sub = jax.random.split(key_holder[0])
        return sub

    def conv_p(cout, cin, k):
        w = 0.1 * jax.random.normal(nxt(), (cout, cin, k, k), jnp.float32)
        b = 0.01 * jax.random.normal(nxt(), (cout,), jnp.float32)
        return w, b

    for i in range(n):
        cin = INPUT_CHANNELS if i == 0 else FILTERS_DOWN[i - 1]
        cout, k = FILTERS_DOWN[i], KS_DOWN[i]
        w1, b1 = conv_p(cout, cin, k)
        w2, b2 = conv_p(cout, cout, k)
        # b1/b2 kept for structural fidelity; they cancel under training-mode BN.
        params["down"].append(dict(w1=w1, b1=b1, w2=w2, b2=b2,
                                   bn_g=jnp.ones((cout,), jnp.float32),
                                   bn_b=jnp.zeros((cout,), jnp.float32)))
    for i in range(n):
        cin, cout, k = FILTERS_DOWN[i], FILTERS_SKIP[i], KS_SKIP[i]
        w, b = conv_p(cout, cin, k)
        params["skip"].append(dict(w=w, b=b,
                                   bn_g=jnp.ones((cout,), jnp.float32),
                                   bn_b=jnp.zeros((cout,), jnp.float32)))
    # up_modules constructed for j = n-1 .. 0 (same order they are used in forward)
    for j in range(n - 1, -1, -1):
        in_d = FILTERS_UP[j] if j == n - 1 else FILTERS_SKIP[j] + FILTERS_UP[j + 1]
        cout, k = FILTERS_UP[j], KS_UP[j]
        w1, b1 = conv_p(cout, in_d, k)
        w2, b2 = conv_p(cout, cout, 1)
        params["up"].append(dict(w1=w1, b1=b1, w2=w2, b2=b2,
                                 bn_g=jnp.ones((cout,), jnp.float32),
                                 bn_b=jnp.zeros((cout,), jnp.float32),
                                 bnf_g=jnp.ones((in_d,), jnp.float32),
                                 bnf_b=jnp.zeros((in_d,), jnp.float32)))
    wl, bl = conv_p(OUTPUT_CHANNELS, FILTERS_UP[0], 1)
    params["last_w"], params["last_b"] = wl, bl
    return params


# ---------------------------------------------------------------- main
if __name__ == "__main__":
    key = jax.random.PRNGKey(0)
    pkey, xkey = jax.random.split(key)
    params = build_params(pkey)
    x = jax.random.normal(xkey, (2, INPUT_CHANNELS, 16, 16), jnp.float32)

    fwd = jax.jit(skip_architecture)
    y = jax.block_until_ready(fwd(x, params))

    assert y.shape == (2, OUTPUT_CHANNELS, 16, 16), y.shape
    assert bool(jnp.all(jnp.isfinite(y)))
    assert bool(jnp.all((y >= 0.0) & (y <= 1.0)))  # sigmoid output range
    print("KERNEL_OK")
</pallas_src>

<mosaic_0001>
module attributes {stable_mosaic.version = 11 : i64} {
  func.func @_conv_stats_kernel(%arg0: i32, %arg1: memref<8x27xbf16, #tpu.memory_space<vmem>>, %arg2: memref<27x128xbf16, #tpu.memory_space<vmem>>, %arg3: memref<8x128xf32, #tpu.memory_space<vmem>>, %arg4: memref<8x128xf32, #tpu.memory_space<vmem>>, %arg5: memref<8x128xf32, #tpu.memory_space<vmem>>) attributes {dimension_semantics = [#tpu.dimension_semantics<parallel>], iteration_bounds = array<i64: 1>, scalar_prefetch = 0 : i64, scratch_operands = 0 : i64, tpu.core_type = #tpu.core_type<tc>, window_params = [{pipeline_mode = #tpu.pipeline_mode<synchronous>, transform_indices = @transform_0, window_bounds = array<i64: 8, 27>}, {transform_indices = @transform_1, window_bounds = array<i64: 27, 128>}, {transform_indices = @transform_2, window_bounds = array<i64: 8, 128>}, {transform_indices = @transform_3, window_bounds = array<i64: 8, 128>}, {transform_indices = @transform_4, window_bounds = array<i64: 8, 128>}]} {
    %c0 = arith.constant 0 : index
    %c0_0 = arith.constant 0 : index
    %0 = vector.load %arg1[%c0, %c0_0] : memref<8x27xbf16, #tpu.memory_space<vmem>>, vector<8x27xbf16>
    %c0_1 = arith.constant 0 : index
    %c0_2 = arith.constant 0 : index
    %1 = vector.load %arg2[%c0_1, %c0_2] : memref<27x128xbf16, #tpu.memory_space<vmem>>, vector<27x128xbf16>
    %cst = arith.constant dense<0.000000e+00> : vector<8x128xf32>
    %2 = tpu.matmul %0, %1, %cst {dimension_numbers = #tpu.dot_dimension_numbers<[1], [0], [0], [1], [0, 0, 1, 1], [], []>} : vector<8x27xbf16>, vector<27x128xbf16>, vector<8x128xf32> -> vector<8x128xf32>
    %c0_3 = arith.constant 0 : index
    %c0_4 = arith.constant 0 : index
    %3 = vector.load %arg3[%c0_3, %c0_4] : memref<8x128xf32, #tpu.memory_space<vmem>>, vector<8x128xf32>
    tpu.vector_store %arg3[%c0_3, %c0_4], %2 {strides = array<i32>} : memref<8x128xf32, #tpu.memory_space<vmem>>, vector<8x128xf32>,
    %cst_5 = arith.constant dense<0.000000e+00> : vector<8xf32>
    %4 = vector.multi_reduction <add>, %2, %cst_5 [1] : vector<8x128xf32> to vector<8xf32>
    %5 = vector.shape_cast %4 : vector<8xf32> to vector<8x1xf32>
    %6 = vector.shape_cast %5 : vector<8x1xf32> to vector<8x1xf32>
    %7 = vector.broadcast %6 : vector<8x1xf32> to vector<8x128xf32>
    %c0_6 = arith.constant 0 : index
    %c0_7 = arith.constant 0 : index
    %8 = vector.load %arg4[%c0_6, %c0_7] : memref<8x128xf32, #tpu.memory_space<vmem>>, vector<8x128xf32>
    tpu.vector_store %arg4[%c0_6, %c0_7], %7 {strides = array<i32>} : memref<8x128xf32, #tpu.memory_space<vmem>>, vector<8x128xf32>,
    %9 = arith.mulf %2, %2 : vector<8x128xf32>
    %cst_8 = arith.constant dense<0.000000e+00> : vector<8xf32>
    %10 = vector.multi_reduction <add>, %9, %cst_8 [1] : vector<8x128xf32> to vector<8xf32>
    %11 = vector.shape_cast %10 : vector<8xf32> to vector<8x1xf32>
    %12 = vector.shape_cast %11 : vector<8x1xf32> to vector<8x1xf32>
    %13 = vector.broadcast %12 : vector<8x1xf32> to vector<8x128xf32>
    %c0_9 = arith.constant 0 : index
    %c0_10 = arith.constant 0 : index
    %14 = vector.load %arg5[%c0_9, %c0_10] : memref<8x128xf32, #tpu.memory_space<vmem>>, vector<8x128xf32>
    tpu.vector_store %arg5[%c0_9, %c0_10], %13 {strides = array<i32>} : memref<8x128xf32, #tpu.memory_space<vmem>>, vector<8x128xf32>,
    return
  }
  func.func @transform_0(%arg0: i32) -> (i32, i32) {
    %c0_i32 = arith.constant 0 : i32
    %c0_i32_0 = arith.constant 0 : i32
    %c0_i32_1 = arith.constant 0 : i32
    return %c0_i32, %c0_i32_0 : i32, i32
  }
  func.func @transform_1(%arg0: i32) -> (i32, i32) {
    %c0_i32 = arith.constant 0 : i32
    %c0_i32_0 = arith.constant 0 : i32
    return %c0_i32, %arg0 : i32, i32
  }
  func.func @transform_2(%arg0: i32) -> (i32, i32) {
    %c0_i32 = arith.constant 0 : i32
    %c0_i32_0 = arith.constant 0 : i32
    return %c0_i32, %arg0 : i32, i32
  }
  func.func @transform_3(%arg0: i32) -> (i32, i32) {
    %c0_i32 = arith.constant 0 : i32
    %c0_i32_0 = arith.constant 0 : i32
    return %c0_i32, %arg0 : i32, i32
  }
  func.func @transform_4(%arg0: i32) -> (i32, i32) {
    %c0_i32 = arith.constant 0 : i32
    %c0_i32_0 = arith.constant 0 : i32
    return %c0_i32, %arg0 : i32, i32
  }
}

module attributes {stable_mosaic.version = 11 : i64} {
  func.func @_scale_shift_act_kernel(%arg0: i32, %arg1: memref<8x128xf32, #tpu.memory_space<vmem>>, %arg2: memref<8x1xf32, #tpu.memory_space<vmem>>, %arg3: memref<8x1xf32, #tpu.memory_space<vmem>>, %arg4: memref<8x128xf32, #tpu.memory_space<vmem>>) attributes {dimension_semantics = [#tpu.dimension_semantics<parallel>], iteration_bounds = array<i64: 1>, scalar_prefetch = 0 : i64, scratch_operands = 0 : i64, tpu.core_type = #tpu.core_type<tc>, window_params = [{transform_indices = @transform_0, window_bounds = array<i64: 8, 128>}, {pipeline_mode = #tpu.pipeline_mode<synchronous>, transform_indices = @transform_1, window_bounds = array<i64: 8, 1>}, {pipeline_mode = #tpu.pipeline_mode<synchronous>, transform_indices = @transform_2, window_bounds = array<i64: 8, 1>}, {transform_indices = @transform_3, window_bounds = array<i64: 8, 128>}]} {
    %c0 = arith.constant 0 : index
    %c0_0 = arith.constant 0 : index
    %0 = vector.load %arg1[%c0, %c0_0] : memref<8x128xf32, #tpu.memory_space<vmem>>, vector<8x128xf32>
    %c0_1 = arith.constant 0 : index
    %c0_2 = arith.constant 0 : index
    %1 = vector.load %arg2[%c0_1, %c0_2] : memref<8x1xf32, #tpu.memory_space<vmem>>, vector<8x1xf32>
    %2 = vector.broadcast %1 : vector<8x1xf32> to vector<8x128xf32>
    %3 = arith.mulf %0, %2 : vector<8x128xf32>
    %c0_3 = arith.constant 0 : index
    %c0_4 = arith.constant 0 : index
    %4 = vector.load %arg3[%c0_3, %c0_4] : memref<8x1xf32, #tpu.memory_space<vmem>>, vector<8x1xf32>
    %5 = vector.broadcast %4 : vector<8x1xf32> to vector<8x128xf32>
    %6 = arith.addf %3, %5 : vector<8x128xf32>
    %cst = arith.constant 0.000000e+00 : f32
    %7 = vector.broadcast %cst : f32 to vector<8x128xf32>
    %8 = arith.cmpf oge, %6, %7 : vector<8x128xf32>
    %cst_5 = arith.constant 2.000000e-01 : f32
    %9 = vector.broadcast %cst_5 : f32 to vector<8x128xf32>
    %10 = arith.mulf %9, %6 : vector<8x128xf32>
    %11 = arith.select %8, %6, %10 : vector<8x128xi1>, vector<8x128xf32>
    %c0_6 = arith.constant 0 : index
    %c0_7 = arith.constant 0 : index
    %12 = vector.load %arg4[%c0_6, %c0_7] : memref<8x128xf32, #tpu.memory_space<vmem>>, vector<8x128xf32>
    tpu.vector_store %arg4[%c0_6, %c0_7], %11 {strides = array<i32>} : memref<8x128xf32, #tpu.memory_space<vmem>>, vector<8x128xf32>,
    return
  }
  func.func @transform_0(%arg0: i32) -> (i32, i32) {
    %c0_i32 = arith.constant 0 : i32
    %c0_i32_0 = arith.constant 0 : i32
    return %c0_i32, %arg0 : i32, i32
  }
  func.func @transform_1(%arg0: i32) -> (i32, i32) {
    %c0_i32 = arith.constant 0 : i32
    %c0_i32_0 = arith.constant 0 : i32
    %c0_i32_1 = arith.constant 0 : i32
    return %c0_i32, %c0_i32_0 : i32, i32
  }
  func.func @transform_2(%arg0: i32) -> (i32, i32) {
    %c0_i32 = arith.constant 0 : i32
    %c0_i32_0 = arith.constant 0 : i32
    %c0_i32_1 = arith.constant 0 : i32
    return %c0_i32, %c0_i32_0 : i32, i32
  }
  func.func @transform_3(%arg0: i32) -> (i32, i32) {
    %c0_i32 = arith.constant 0 : i32
    %c0_i32_0 = arith.constant 0 : i32
    return %c0_i32, %arg0 : i32, i32
  }
}

module attributes {stable_mosaic.version = 11 : i64} {
  func.func @_conv_stats_kernel(%arg0: i32, %arg1: memref<8x72xbf16, #tpu.memory_space<vmem>>, %arg2: memref<72x128xbf16, #tpu.memory_space<vmem>>, %arg3: memref<8x128xf32, #tpu.memory_space<vmem>>, %arg4: memref<8x128xf32, #tpu.memory_space<vmem>>, %arg5: memref<8x128xf32, #tpu.memory_space<vmem>>) attributes {dimension_semantics = [#tpu.dimension_semantics<parallel>], iteration_bounds = array<i64: 1>, scalar_prefetch = 0 : i64, scratch_operands = 0 : i64, tpu.core_type = #tpu.core_type<tc>, window_params = [{pipeline_mode = #tpu.pipeline_mode<synchronous>, transform_indices = @transform_0, window_bounds = array<i64: 8, 72>}, {transform_indices = @transform_1, window_bounds = array<i64: 72, 128>}, {transform_indices = @transform_2, window_bounds = array<i64: 8, 128>}, {transform_indices = @transform_3, window_bounds = array<i64: 8, 128>}, {transform_indices = @transform_4, window_bounds = array<i64: 8, 128>}]} {
    %c0 = arith.constant 0 : index
    %c0_0 = arith.constant 0 : index
    %0 = vector.load %arg1[%c0, %c0_0] : memref<8x72xbf16, #tpu.memory_space<vmem>>, vector<8x72xbf16>
    %c0_1 = arith.constant 0 : index
    %c0_2 = arith.constant 0 : index
    %1 = vector.load %arg2[%c0_1, %c0_2] : memref<72x128xbf16, #tpu.memory_space<vmem>>, vector<72x128xbf16>
    %cst = arith.constant dense<0.000000e+00> : vector<8x128xf32>
    %2 = tpu.matmul %0, %1, %cst {dimension_numbers = #tpu.dot_dimension_numbers<[1], [0], [0], [1], [0, 0, 1, 1], [], []>} : vector<8x72xbf16>, vector<72x128xbf16>, vector<8x128xf32> -> vector<8x128xf32>
    %c0_3 = arith.constant 0 : index
    %c0_4 = arith.constant 0 : index
    %3 = vector.load %arg3[%c0_3, %c0_4] : memref<8x128xf32, #tpu.memory_space<vmem>>, vector<8x128xf32>
    tpu.vector_store %arg3[%c0_3, %c0_4], %2 {strides = array<i32>} : memref<8x128xf32, #tpu.memory_space<vmem>>, vector<8x128xf32>,
    %cst_5 = arith.constant dense<0.000000e+00> : vector<8xf32>
    %4 = vector.multi_reduction <add>, %2, %cst_5 [1] : vector<8x128xf32> to vector<8xf32>
    %5 = vector.shape_cast %4 : vector<8xf32> to vector<8x1xf32>
    %6 = vector.shape_cast %5 : vector<8x1xf32> to vector<8x1xf32>
    %7 = vector.broadcast %6 : vector<8x1xf32> to vector<8x128xf32>
    %c0_6 = arith.constant 0 : index
    %c0_7 = arith.constant 0 : index
    %8 = vector.load %arg4[%c0_6, %c0_7] : memref<8x128xf32, #tpu.memory_space<vmem>>, vector<8x128xf32>
    tpu.vector_store %arg4[%c0_6, %c0_7], %7 {strides = array<i32>} : memref<8x128xf32, #tpu.memory_space<vmem>>, vector<8x128xf32>,
    %9 = arith.mulf %2, %2 : vector<8x128xf32>
    %cst_8 = arith.constant dense<0.000000e+00> : vector<8xf32>
    %10 = vector.multi_reduction <add>, %9, %cst_8 [1] : vector<8x128xf32> to vector<8xf32>
    %11 = vector.shape_cast %10 : vector<8xf32> to vector<8x1xf32>
    %12 = vector.shape_cast %11 : vector<8x1xf32> to vector<8x1xf32>
    %13 = vector.broadcast %12 : vector<8x1xf32> to vector<8x128xf32>
    %c0_9 = arith.constant 0 : index
    %c0_10 = arith.constant 0 : index
    %14 = vector.load %arg5[%c0_9, %c0_10] : memref<8x128xf32, #tpu.memory_space<vmem>>, vector<8x128xf32>
    tpu.vector_store %arg5[%c0_9, %c0_10], %13 {strides = array<i32>} : memref<8x128xf32, #tpu.memory_space<vmem>>, vector<8x128xf32>,
    return
  }
  func.func @transform_0(%arg0: i32) -> (i32, i32) {
    %c0_i32 = arith.constant 0 : i32
    %c0_i32_0 = arith.constant 0 : i32
    %c0_i32_1 = arith.constant 0 : i32
    return %c0_i32, %c0_i32_0 : i32, i32
  }
  func.func @transform_1(%arg0: i32) -> (i32, i32) {
    %c0_i32 = arith.constant 0 : i32
    %c0_i32_0 = arith.constant 0 : i32
    return %c0_i32, %arg0 : i32, i32
  }
  func.func @transform_2(%arg0: i32) -> (i32, i32) {
    %c0_i32 = arith.constant 0 : i32
    %c0_i32_0 = arith.constant 0 : i32
    return %c0_i32, %arg0 : i32, i32
  }
  func.func @transform_3(%arg0: i32) -> (i32, i32) {
    %c0_i32 = arith.constant 0 : i32
    %c0_i32_0 = arith.constant 0 : i32
    return %c0_i32, %arg0 : i32, i32
  }
  func.func @transform_4(%arg0: i32) -> (i32, i32) {
    %c0_i32 = arith.constant 0 : i32
    %c0_i32_0 = arith.constant 0 : i32
    return %c0_i32, %arg0 : i32, i32
  }
}

module attributes {stable_mosaic.version = 11 : i64} {
  func.func @_conv_stats_kernel(%arg0: i32, %arg1: memref<4x8xbf16, #tpu.memory_space<vmem>>, %arg2: memref<8x128xbf16, #tpu.memory_space<vmem>>, %arg3: memref<4x128xf32, #tpu.memory_space<vmem>>, %arg4: memref<4x128xf32, #tpu.memory_space<vmem>>, %arg5: memref<4x128xf32, #tpu.memory_space<vmem>>) attributes {dimension_semantics = [#tpu.dimension_semantics<parallel>], iteration_bounds = array<i64: 1>, scalar_prefetch = 0 : i64, scratch_operands = 0 : i64, tpu.core_type = #tpu.core_type<tc>, window_params = [{pipeline_mode = #tpu.pipeline_mode<synchronous>, transform_indices = @transform_0, window_bounds = array<i64: 4, 8>}, {transform_indices = @transform_1, window_bounds = array<i64: 8, 128>}, {transform_indices = @transform_2, window_bounds = array<i64: 4, 128>}, {transform_indices = @transform_3, window_bounds = array<i64: 4, 128>}, {transform_indices = @transform_4, window_bounds = array<i64: 4, 128>}]} {
    %c0 = arith.constant 0 : index
    %c0_0 = arith.constant 0 : index
    %0 = vector.load %arg1[%c0, %c0_0] : memref<4x8xbf16, #tpu.memory_space<vmem>>, vector<4x8xbf16>
    %c0_1 = arith.constant 0 : index
    %c0_2 = arith.constant 0 : index
    %1 = vector.load %arg2[%c0_1, %c0_2] : memref<8x128xbf16, #tpu.memory_space<vmem>>, vector<8x128xbf16>
    %cst = arith.constant dense<0.000000e+00> : vector<4x128xf32>
    %2 = tpu.matmul %0, %1, %cst {dimension_numbers = #tpu.dot_dimension_numbers<[1], [0], [0], [1], [0, 0, 1, 1], [], []>} : vector<4x8xbf16>, vector<8x128xbf16>, vector<4x128xf32> -> vector<4x128xf32>
    %c0_3 = arith.constant 0 : index
    %c0_4 = arith.constant 0 : index
    %3 = vector.load %arg3[%c0_3, %c0_4] : memref<4x128xf32, #tpu.memory_space<vmem>>, vector<4x128xf32>
    tpu.vector_store %arg3[%c0_3, %c0_4], %2 {strides = array<i32>} : memref<4x128xf32, #tpu.memory_space<vmem>>, vector<4x128xf32>,
    %cst_5 = arith.constant dense<0.000000e+00> : vector<4xf32>
    %4 = vector.multi_reduction <add>, %2, %cst_5 [1] : vector<4x128xf32> to vector<4xf32>
    %5 = vector.shape_cast %4 : vector<4xf32> to vector<4x1xf32>
    %6 = vector.shape_cast %5 : vector<4x1xf32> to vector<4x1xf32>
    %7 = vector.broadcast %6 : vector<4x1xf32> to vector<4x128xf32>
    %c0_6 = arith.constant 0 : index
    %c0_7 = arith.constant 0 : index
    %8 = vector.load %arg4[%c0_6, %c0_7] : memref<4x128xf32, #tpu.memory_space<vmem>>, vector<4x128xf32>
    tpu.vector_store %arg4[%c0_6, %c0_7], %7 {strides = array<i32>} : memref<4x128xf32, #tpu.memory_space<vmem>>, vector<4x128xf32>,
    %9 = arith.mulf %2, %2 : vector<4x128xf32>
    %cst_8 = arith.constant dense<0.000000e+00> : vector<4xf32>
    %10 = vector.multi_reduction <add>, %9, %cst_8 [1] : vector<4x128xf32> to vector<4xf32>
    %11 = vector.shape_cast %10 : vector<4xf32> to vector<4x1xf32>
    %12 = vector.shape_cast %11 : vector<4x1xf32> to vector<4x1xf32>
    %13 = vector.broadcast %12 : vector<4x1xf32> to vector<4x128xf32>
    %c0_9 = arith.constant 0 : index
    %c0_10 = arith.constant 0 : index
    %14 = vector.load %arg5[%c0_9, %c0_10] : memref<4x128xf32, #tpu.memory_space<vmem>>, vector<4x128xf32>
    tpu.vector_store %arg5[%c0_9, %c0_10], %13 {strides = array<i32>} : memref<4x128xf32, #tpu.memory_space<vmem>>, vector<4x128xf32>,
    return
  }
  func.func @transform_0(%arg0: i32) -> (i32, i32) {
    %c0_i32 = arith.constant 0 : i32
    %c0_i32_0 = arith.constant 0 : i32
    %c0_i32_1 = arith.constant 0 : i32
    return %c0_i32, %c0_i32_0 : i32, i32
  }
  func.func @transform_1(%arg0: i32) -> (i32, i32) {
    %c0_i32 = arith.constant 0 : i32
    %c0_i32_0 = arith.constant 0 : i32
    return %c0_i32, %arg0 : i32, i32
  }
  func.func @transform_2(%arg0: i32) -> (i32, i32) {
    %c0_i32 = arith.constant 0 : i32
    %c0_i32_0 = arith.constant 0 : i32
    return %c0_i32, %arg0 : i32, i32
  }
  func.func @transform_3(%arg0: i32) -> (i32, i32) {
    %c0_i32 = arith.constant 0 : i32
    %c0_i32_0 = arith.constant 0 : i32
    return %c0_i32, %arg0 : i32, i32
  }
  func.func @transform_4(%arg0: i32) -> (i32, i32) {
    %c0_i32 = arith.constant 0 : i32
    %c0_i32_0 = arith.constant 0 : i32
    return %c0_i32, %arg0 : i32, i32
  }
}

module attributes {stable_mosaic.version = 11 : i64} {
  func.func @_scale_shift_act_kernel(%arg0: i32, %arg1: memref<4x128xf32, #tpu.memory_space<vmem>>, %arg2: memref<4x1xf32, #tpu.memory_space<vmem>>, %arg3: memref<4x1xf32, #tpu.memory_space<vmem>>, %arg4: memref<4x128xf32, #tpu.memory_space<vmem>>) attributes {dimension_semantics = [#tpu.dimension_semantics<parallel>], iteration_bounds = array<i64: 1>, scalar_prefetch = 0 : i64, scratch_operands = 0 : i64, tpu.core_type = #tpu.core_type<tc>, window_params = [{transform_indices = @transform_0, window_bounds = array<i64: 4, 128>}, {pipeline_mode = #tpu.pipeline_mode<synchronous>, transform_indices = @transform_1, window_bounds = array<i64: 4, 1>}, {pipeline_mode = #tpu.pipeline_mode<synchronous>, transform_indices = @transform_2, window_bounds = array<i64: 4, 1>}, {transform_indices = @transform_3, window_bounds = array<i64: 4, 128>}]} {
    %c0 = arith.constant 0 : index
    %c0_0 = arith.constant 0 : index
    %0 = vector.load %arg1[%c0, %c0_0] : memref<4x128xf32, #tpu.memory_space<vmem>>, vector<4x128xf32>
    %c0_1 = arith.constant 0 : index
    %c0_2 = arith.constant 0 : index
    %1 = vector.load %arg2[%c0_1, %c0_2] : memref<4x1xf32, #tpu.memory_space<vmem>>, vector<4x1xf32>
    %2 = vector.broadcast %1 : vector<4x1xf32> to vector<4x128xf32>
    %3 = arith.mulf %0, %2 : vector<4x128xf32>
    %c0_3 = arith.constant 0 : index
    %c0_4 = arith.constant 0 : index
    %4 = vector.load %arg3[%c0_3, %c0_4] : memref<4x1xf32, #tpu.memory_space<vmem>>, vector<4x1xf32>
    %5 = vector.broadcast %4 : vector<4x1xf32> to vector<4x128xf32>
    %6 = arith.addf %3, %5 : vector<4x128xf32>
    %cst = arith.constant 0.000000e+00 : f32
    %7 = vector.broadcast %cst : f32 to vector<4x128xf32>
    %8 = arith.cmpf oge, %6, %7 : vector<4x128xf32>
    %cst_5 = arith.constant 2.000000e-01 : f32
    %9 = vector.broadcast %cst_5 : f32 to vector<4x128xf32>
    %10 = arith.mulf %9, %6 : vector<4x128xf32>
    %11 = arith.select %8, %6, %10 : vector<4x128xi1>, vector<4x128xf32>
    %c0_6 = arith.constant 0 : index
    %c0_7 = arith.constant 0 : index
    %12 = vector.load %arg4[%c0_6, %c0_7] : memref<4x128xf32, #tpu.memory_space<vmem>>, vector<4x128xf32>
    tpu.vector_store %arg4[%c0_6, %c0_7], %11 {strides = array<i32>} : memref<4x128xf32, #tpu.memory_space<vmem>>, vector<4x128xf32>,
    return
  }
  func.func @transform_0(%arg0: i32) -> (i32, i32) {
    %c0_i32 = arith.constant 0 : i32
    %c0_i32_0 = arith.constant 0 : i32
    return %c0_i32, %arg0 : i32, i32
  }
  func.func @transform_1(%arg0: i32) -> (i32, i32) {
    %c0_i32 = arith.constant 0 : i32
    %c0_i32_0 = arith.constant 0 : i32
    %c0_i32_1 = arith.constant 0 : i32
    return %c0_i32, %c0_i32_0 : i32, i32
  }
  func.func @transform_2(%arg0: i32) -> (i32, i32) {
    %c0_i32 = arith.constant 0 : i32
    %c0_i32_0 = arith.constant 0 : i32
    %c0_i32_1 = arith.constant 0 : i32
    return %c0_i32, %c0_i32_0 : i32, i32
  }
  func.func @transform_3(%arg0: i32) -> (i32, i32) {
    %c0_i32 = arith.constant 0 : i32
    %c0_i32_0 = arith.constant 0 : i32
    return %c0_i32, %arg0 : i32, i32
  }
}

module attributes {stable_mosaic.version = 11 : i64} {
  func.func @_stats_kernel(%arg0: i32, %arg1: memref<4x128xf32, #tpu.memory_space<vmem>>, %arg2: memref<4x128xf32, #tpu.memory_space<vmem>>, %arg3: memref<4x128xf32, #tpu.memory_space<vmem>>) attributes {dimension_semantics = [#tpu.dimension_semantics<parallel>], iteration_bounds = array<i64: 1>, scalar_prefetch = 0 : i64, scratch_operands = 0 : i64, tpu.core_type = #tpu.core_type<tc>, window_params = [{transform_indices = @transform_0, window_bounds = array<i64: 4, 128>}, {transform_indices = @transform_1, window_bounds = array<i64: 4, 128>}, {transform_indices = @transform_2, window_bounds = array<i64: 4, 128>}]} {
    %c0 = arith.constant 0 : index
    %c0_0 = arith.constant 0 : index
    %0 = vector.load %arg1[%c0, %c0_0] : memref<4x128xf32, #tpu.memory_space<vmem>>, vector<4x128xf32>
    %cst = arith.constant dense<0.000000e+00> : vector<4xf32>
    %1 = vector.multi_reduction <add>, %0, %cst [1] : vector<4x128xf32> to vector<4xf32>
    %2 = vector.shape_cast %1 : vector<4xf32> to vector<4x1xf32>
    %3 = vector.shape_cast %2 : vector<4x1xf32> to vector<4x1xf32>
    %4 = vector.broadcast %3 : vector<4x1xf32> to vector<4x128xf32>
    %c0_1 = arith.constant 0 : index
    %c0_2 = arith.constant 0 : index
    %5 = vector.load %arg2[%c0_1, %c0_2] : memref<4x128xf32, #tpu.memory_space<vmem>>, vector<4x128xf32>
    tpu.vector_store %arg2[%c0_1, %c0_2], %4 {strides = array<i32>} : memref<4x128xf32, #tpu.memory_space<vmem>>, vector<4x128xf32>,
    %6 = arith.mulf %0, %0 : vector<4x128xf32>
    %cst_3 = arith.constant dense<0.000000e+00> : vector<4xf32>
    %7 = vector.multi_reduction <add>, %6, %cst_3 [1] : vector<4x128xf32> to vector<4xf32>
    %8 = vector.shape_cast %7 : vector<4xf32> to vector<4x1xf32>
    %9 = vector.shape_cast %8 : vector<4x1xf32> to vector<4x1xf32>
    %10 = vector.broadcast %9 : vector<4x1xf32> to vector<4x128xf32>
    %c0_4 = arith.constant 0 : index
    %c0_5 = arith.constant 0 : index
    %11 = vector.load %arg3[%c0_4, %c0_5] : memref<4x128xf32, #tpu.memory_space<vmem>>, vector<4x128xf32>
    tpu.vector_store %arg3[%c0_4, %c0_5], %10 {strides = array<i32>} : memref<4x128xf32, #tpu.memory_space<vmem>>, vector<4x128xf32>,
    return
  }
  func.func @transform_0(%arg0: i32) -> (i32, i32) {
    %c0_i32 = arith.constant 0 : i32
    %c0_i32_0 = arith.constant 0 : i32
    return %c0_i32, %arg0 : i32, i32
  }
  func.func @transform_1(%arg0: i32) -> (i32, i32) {
    %c0_i32 = arith.constant 0 : i32
    %c0_i32_0 = arith.constant 0 : i32
    return %c0_i32, %arg0 : i32, i32
  }
  func.func @transform_2(%arg0: i32) -> (i32, i32) {
    %c0_i32 = arith.constant 0 : i32
    %c0_i32_0 = arith.constant 0 : i32
    return %c0_i32, %arg0 : i32, i32
  }
}

module attributes {stable_mosaic.version = 11 : i64} {
  func.func @_conv_stats_kernel(%arg0: i32, %arg1: memref<16x72xbf16, #tpu.memory_space<vmem>>, %arg2: memref<72x128xbf16, #tpu.memory_space<vmem>>, %arg3: memref<16x128xf32, #tpu.memory_space<vmem>>, %arg4: memref<16x128xf32, #tpu.memory_space<vmem>>, %arg5: memref<16x128xf32, #tpu.memory_space<vmem>>) attributes {dimension_semantics = [#tpu.dimension_semantics<parallel>], iteration_bounds = array<i64: 1>, scalar_prefetch = 0 : i64, scratch_operands = 0 : i64, tpu.core_type = #tpu.core_type<tc>, window_params = [{pipeline_mode = #tpu.pipeline_mode<synchronous>, transform_indices = @transform_0, window_bounds = array<i64: 16, 72>}, {transform_indices = @transform_1, window_bounds = array<i64: 72, 128>}, {transform_indices = @transform_2, window_bounds = array<i64: 16, 128>}, {transform_indices = @transform_3, window_bounds = array<i64: 16, 128>}, {transform_indices = @transform_4, window_bounds = array<i64: 16, 128>}]} {
    %c0 = arith.constant 0 : index
    %c0_0 = arith.constant 0 : index
    %0 = vector.load %arg1[%c0, %c0_0] : memref<16x72xbf16, #tpu.memory_space<vmem>>, vector<16x72xbf16>
    %c0_1 = arith.constant 0 : index
    %c0_2 = arith.constant 0 : index
    %1 = vector.load %arg2[%c0_1, %c0_2] : memref<72x128xbf16, #tpu.memory_space<vmem>>, vector<72x128xbf16>
    %cst = arith.constant dense<0.000000e+00> : vector<16x128xf32>
    %2 = tpu.matmul %0, %1, %cst {dimension_numbers = #tpu.dot_dimension_numbers<[1], [0], [0], [1], [0, 0, 1, 1], [], []>} : vector<16x72xbf16>, vector<72x128xbf16>, vector<16x128xf32> -> vector<16x128xf32>
    %c0_3 = arith.constant 0 : index
    %c0_4 = arith.constant 0 : index
    %3 = vector.load %arg3[%c0_3, %c0_4] : memref<16x128xf32, #tpu.memory_space<vmem>>, vector<16x128xf32>
    tpu.vector_store %arg3[%c0_3, %c0_4], %2 {strides = array<i32>} : memref<16x128xf32, #tpu.memory_space<vmem>>, vector<16x128xf32>,
    %cst_5 = arith.constant dense<0.000000e+00> : vector<16xf32>
    %4 = vector.multi_reduction <add>, %2, %cst_5 [1] : vector<16x128xf32> to vector<16xf32>
    %5 = vector.shape_cast %4 : vector<16xf32> to vector<16x1xf32>
    %6 = vector.shape_cast %5 : vector<16x1xf32> to vector<16x1xf32>
    %7 = vector.broadcast %6 : vector<16x1xf32> to vector<16x128xf32>
    %c0_6 = arith.constant 0 : index
    %c0_7 = arith.constant 0 : index
    %8 = vector.load %arg4[%c0_6, %c0_7] : memref<16x128xf32, #tpu.memory_space<vmem>>, vector<16x128xf32>
    tpu.vector_store %arg4[%c0_6, %c0_7], %7 {strides = array<i32>} : memref<16x128xf32, #tpu.memory_space<vmem>>, vector<16x128xf32>,
    %9 = arith.mulf %2, %2 : vector<16x128xf32>
    %cst_8 = arith.constant dense<0.000000e+00> : vector<16xf32>
    %10 = vector.multi_reduction <add>, %9, %cst_8 [1] : vector<16x128xf32> to vector<16xf32>
    %11 = vector.shape_cast %10 : vector<16xf32> to vector<16x1xf32>
    %12 = vector.shape_cast %11 : vector<16x1xf32> to vector<16x1xf32>
    %13 = vector.broadcast %12 : vector<16x1xf32> to vector<16x128xf32>
    %c0_9 = arith.constant 0 : index
    %c0_10 = arith.constant 0 : index
    %14 = vector.load %arg5[%c0_9, %c0_10] : memref<16x128xf32, #tpu.memory_space<vmem>>, vector<16x128xf32>
    tpu.vector_store %arg5[%c0_9, %c0_10], %13 {strides = array<i32>} : memref<16x128xf32, #tpu.memory_space<vmem>>, vector<16x128xf32>,
    return
  }
  func.func @transform_0(%arg0: i32) -> (i32, i32) {
    %c0_i32 = arith.constant 0 : i32
    %c0_i32_0 = arith.constant 0 : i32
    %c0_i32_1 = arith.constant 0 : i32
    return %c0_i32, %c0_i32_0 : i32, i32
  }
  func.func @transform_1(%arg0: i32) -> (i32, i32) {
    %c0_i32 = arith.constant 0 : i32
    %c0_i32_0 = arith.constant 0 : i32
    return %c0_i32, %arg0 : i32, i32
  }
  func.func @transform_2(%arg0: i32) -> (i32, i32) {
    %c0_i32 = arith.constant 0 : i32
    %c0_i32_0 = arith.constant 0 : i32
    return %c0_i32, %arg0 : i32, i32
  }
  func.func @transform_3(%arg0: i32) -> (i32, i32) {
    %c0_i32 = arith.constant 0 : i32
    %c0_i32_0 = arith.constant 0 : i32
    return %c0_i32, %arg0 : i32, i32
  }
  func.func @transform_4(%arg0: i32) -> (i32, i32) {
    %c0_i32 = arith.constant 0 : i32
    %c0_i32_0 = arith.constant 0 : i32
    return %c0_i32, %arg0 : i32, i32
  }
}

module attributes {stable_mosaic.version = 11 : i64} {
  func.func @_scale_shift_act_kernel(%arg0: i32, %arg1: memref<16x128xf32, #tpu.memory_space<vmem>>, %arg2: memref<16x1xf32, #tpu.memory_space<vmem>>, %arg3: memref<16x1xf32, #tpu.memory_space<vmem>>, %arg4: memref<16x128xf32, #tpu.memory_space<vmem>>) attributes {dimension_semantics = [#tpu.dimension_semantics<parallel>], iteration_bounds = array<i64: 1>, scalar_prefetch = 0 : i64, scratch_operands = 0 : i64, tpu.core_type = #tpu.core_type<tc>, window_params = [{transform_indices = @transform_0, window_bounds = array<i64: 16, 128>}, {pipeline_mode = #tpu.pipeline_mode<synchronous>, transform_indices = @transform_1, window_bounds = array<i64: 16, 1>}, {pipeline_mode = #tpu.pipeline_mode<synchronous>, transform_indices = @transform_2, window_bounds = array<i64: 16, 1>}, {transform_indices = @transform_3, window_bounds = array<i64: 16, 128>}]} {
    %c0 = arith.constant 0 : index
    %c0_0 = arith.constant 0 : index
    %0 = vector.load %arg1[%c0, %c0_0] : memref<16x128xf32, #tpu.memory_space<vmem>>, vector<16x128xf32>
    %c0_1 = arith.constant 0 : index
    %c0_2 = arith.constant 0 : index
    %1 = vector.load %arg2[%c0_1, %c0_2] : memref<16x1xf32, #tpu.memory_space<vmem>>, vector<16x1xf32>
    %2 = vector.broadcast %1 : vector<16x1xf32> to vector<16x128xf32>
    %3 = arith.mulf %0, %2 : vector<16x128xf32>
    %c0_3 = arith.constant 0 : index
    %c0_4 = arith.constant 0 : index
    %4 = vector.load %arg3[%c0_3, %c0_4] : memref<16x1xf32, #tpu.memory_space<vmem>>, vector<16x1xf32>
    %5 = vector.broadcast %4 : vector<16x1xf32> to vector<16x128xf32>
    %6 = arith.addf %3, %5 : vector<16x128xf32>
    %cst = arith.constant 0.000000e+00 : f32
    %7 = vector.broadcast %cst : f32 to vector<16x128xf32>
    %8 = arith.cmpf oge, %6, %7 : vector<16x128xf32>
    %cst_5 = arith.constant 2.000000e-01 : f32
    %9 = vector.broadcast %cst_5 : f32 to vector<16x128xf32>
    %10 = arith.mulf %9, %6 : vector<16x128xf32>
    %11 = arith.select %8, %6, %10 : vector<16x128xi1>, vector<16x128xf32>
    %c0_6 = arith.constant 0 : index
    %c0_7 = arith.constant 0 : index
    %12 = vector.load %arg4[%c0_6, %c0_7] : memref<16x128xf32, #tpu.memory_space<vmem>>, vector<16x128xf32>
    tpu.vector_store %arg4[%c0_6, %c0_7], %11 {strides = array<i32>} : memref<16x128xf32, #tpu.memory_space<vmem>>, vector<16x128xf32>,
    return
  }
  func.func @transform_0(%arg0: i32) -> (i32, i32) {
    %c0_i32 = arith.constant 0 : i32
    %c0_i32_0 = arith.constant 0 : i32
    return %c0_i32, %arg0 : i32, i32
  }
  func.func @transform_1(%arg0: i32) -> (i32, i32) {
    %c0_i32 = arith.constant 0 : i32
    %c0_i32_0 = arith.constant 0 : i32
    %c0_i32_1 = arith.constant 0 : i32
    return %c0_i32, %c0_i32_0 : i32, i32
  }
  func.func @transform_2(%arg0: i32) -> (i32, i32) {
    %c0_i32 = arith.constant 0 : i32
    %c0_i32_0 = arith.constant 0 : i32
    %c0_i32_1 = arith.constant 0 : i32
    return %c0_i32, %c0_i32_0 : i32, i32
  }
  func.func @transform_3(%arg0: i32) -> (i32, i32) {
    %c0_i32 = arith.constant 0 : i32
    %c0_i32_0 = arith.constant 0 : i32
    return %c0_i32, %arg0 : i32, i32
  }
}

module attributes {stable_mosaic.version = 11 : i64} {
  func.func @_conv_stats_kernel(%arg0: i32, %arg1: memref<16x16xbf16, #tpu.memory_space<vmem>>, %arg2: memref<16x128xbf16, #tpu.memory_space<vmem>>, %arg3: memref<16x128xf32, #tpu.memory_space<vmem>>, %arg4: memref<16x128xf32, #tpu.memory_space<vmem>>, %arg5: memref<16x128xf32, #tpu.memory_space<vmem>>) attributes {dimension_semantics = [#tpu.dimension_semantics<parallel>], iteration_bounds = array<i64: 1>, scalar_prefetch = 0 : i64, scratch_operands = 0 : i64, tpu.core_type = #tpu.core_type<tc>, window_params = [{pipeline_mode = #tpu.pipeline_mode<synchronous>, transform_indices = @transform_0, window_bounds = array<i64: 16, 16>}, {transform_indices = @transform_1, window_bounds = array<i64: 16, 128>}, {transform_indices = @transform_2, window_bounds = array<i64: 16, 128>}, {transform_indices = @transform_3, window_bounds = array<i64: 16, 128>}, {transform_indices = @transform_4, window_bounds = array<i64: 16, 128>}]} {
    %c0 = arith.constant 0 : index
    %c0_0 = arith.constant 0 : index
    %0 = vector.load %arg1[%c0, %c0_0] : memref<16x16xbf16, #tpu.memory_space<vmem>>, vector<16x16xbf16>
    %c0_1 = arith.constant 0 : index
    %c0_2 = arith.constant 0 : index
    %1 = vector.load %arg2[%c0_1, %c0_2] : memref<16x128xbf16, #tpu.memory_space<vmem>>, vector<16x128xbf16>
    %cst = arith.constant dense<0.000000e+00> : vector<16x128xf32>
    %2 = tpu.matmul %0, %1, %cst {dimension_numbers = #tpu.dot_dimension_numbers<[1], [0], [0], [1], [0, 0, 1, 1], [], []>} : vector<16x16xbf16>, vector<16x128xbf16>, vector<16x128xf32> -> vector<16x128xf32>
    %c0_3 = arith.constant 0 : index
    %c0_4 = arith.constant 0 : index
    %3 = vector.load %arg3[%c0_3, %c0_4] : memref<16x128xf32, #tpu.memory_space<vmem>>, vector<16x128xf32>
    tpu.vector_store %arg3[%c0_3, %c0_4], %2 {strides = array<i32>} : memref<16x128xf32, #tpu.memory_space<vmem>>, vector<16x128xf32>,
    %cst_5 = arith.constant dense<0.000000e+00> : vector<16xf32>
    %4 = vector.multi_reduction <add>, %2, %cst_5 [1] : vector<16x128xf32> to vector<16xf32>
    %5 = vector.shape_cast %4 : vector<16xf32> to vector<16x1xf32>
    %6 = vector.shape_cast %5 : vector<16x1xf32> to vector<16x1xf32>
    %7 = vector.broadcast %6 : vector<16x1xf32> to vector<16x128xf32>
    %c0_6 = arith.constant 0 : index
    %c0_7 = arith.constant 0 : index
    %8 = vector.load %arg4[%c0_6, %c0_7] : memref<16x128xf32, #tpu.memory_space<vmem>>, vector<16x128xf32>
    tpu.vector_store %arg4[%c0_6, %c0_7], %7 {strides = array<i32>} : memref<16x128xf32, #tpu.memory_space<vmem>>, vector<16x128xf32>,
    %9 = arith.mulf %2, %2 : vector<16x128xf32>
    %cst_8 = arith.constant dense<0.000000e+00> : vector<16xf32>
    %10 = vector.multi_reduction <add>, %9, %cst_8 [1] : vector<16x128xf32> to vector<16xf32>
    %11 = vector.shape_cast %10 : vector<16xf32> to vector<16x1xf32>
    %12 = vector.shape_cast %11 : vector<16x1xf32> to vector<16x1xf32>
    %13 = vector.broadcast %12 : vector<16x1xf32> to vector<16x128xf32>
    %c0_9 = arith.constant 0 : index
    %c0_10 = arith.constant 0 : index
    %14 = vector.load %arg5[%c0_9, %c0_10] : memref<16x128xf32, #tpu.memory_space<vmem>>, vector<16x128xf32>
    tpu.vector_store %arg5[%c0_9, %c0_10], %13 {strides = array<i32>} : memref<16x128xf32, #tpu.memory_space<vmem>>, vector<16x128xf32>,
    return
  }
  func.func @transform_0(%arg0: i32) -> (i32, i32) {
    %c0_i32 = arith.constant 0 : i32
    %c0_i32_0 = arith.constant 0 : i32
    %c0_i32_1 = arith.constant 0 : i32
    return %c0_i32, %c0_i32_0 : i32, i32
  }
  func.func @transform_1(%arg0: i32) -> (i32, i32) {
    %c0_i32 = arith.constant 0 : i32
    %c0_i32_0 = arith.constant 0 : i32
    return %c0_i32, %arg0 : i32, i32
  }
  func.func @transform_2(%arg0: i32) -> (i32, i32) {
    %c0_i32 = arith.constant 0 : i32
    %c0_i32_0 = arith.constant 0 : i32
    return %c0_i32, %arg0 : i32, i32
  }
  func.func @transform_3(%arg0: i32) -> (i32, i32) {
    %c0_i32 = arith.constant 0 : i32
    %c0_i32_0 = arith.constant 0 : i32
    return %c0_i32, %arg0 : i32, i32
  }
  func.func @transform_4(%arg0: i32) -> (i32, i32) {
    %c0_i32 = arith.constant 0 : i32
    %c0_i32_0 = arith.constant 0 : i32
    return %c0_i32, %arg0 : i32, i32
  }
}

module attributes {stable_mosaic.version = 11 : i64} {
  func.func @_stats_kernel(%arg0: i32, %arg1: memref<16x128xf32, #tpu.memory_space<vmem>>, %arg2: memref<16x128xf32, #tpu.memory_space<vmem>>, %arg3: memref<16x128xf32, #tpu.memory_space<vmem>>) attributes {dimension_semantics = [#tpu.dimension_semantics<parallel>], iteration_bounds = array<i64: 1>, scalar_prefetch = 0 : i64, scratch_operands = 0 : i64, tpu.core_type = #tpu.core_type<tc>, window_params = [{transform_indices = @transform_0, window_bounds = array<i64: 16, 128>}, {transform_indices = @transform_1, window_bounds = array<i64: 16, 128>}, {transform_indices = @transform_2, window_bounds = array<i64: 16, 128>}]} {
    %c0 = arith.constant 0 : index
    %c0_0 = arith.constant 0 : index
    %0 = vector.load %arg1[%c0, %c0_0] : memref<16x128xf32, #tpu.memory_space<vmem>>, vector<16x128xf32>
    %cst = arith.constant dense<0.000000e+00> : vector<16xf32>
    %1 = vector.multi_reduction <add>, %0, %cst [1] : vector<16x128xf32> to vector<16xf32>
    %2 = vector.shape_cast %1 : vector<16xf32> to vector<16x1xf32>
    %3 = vector.shape_cast %2 : vector<16x1xf32> to vector<16x1xf32>
    %4 = vector.broadcast %3 : vector<16x1xf32> to vector<16x128xf32>
    %c0_1 = arith.constant 0 : index
    %c0_2 = arith.constant 0 : index
    %5 = vector.load %arg2[%c0_1, %c0_2] : memref<16x128xf32, #tpu.memory_space<vmem>>, vector<16x128xf32>
    tpu.vector_store %arg2[%c0_1, %c0_2], %4 {strides = array<i32>} : memref<16x128xf32, #tpu.memory_space<vmem>>, vector<16x128xf32>,
    %6 = arith.mulf %0, %0 : vector<16x128xf32>
    %cst_3 = arith.constant dense<0.000000e+00> : vector<16xf32>
    %7 = vector.multi_reduction <add>, %6, %cst_3 [1] : vector<16x128xf32> to vector<16xf32>
    %8 = vector.shape_cast %7 : vector<16xf32> to vector<16x1xf32>
    %9 = vector.shape_cast %8 : vector<16x1xf32> to vector<16x1xf32>
    %10 = vector.broadcast %9 : vector<16x1xf32> to vector<16x128xf32>
    %c0_4 = arith.constant 0 : index
    %c0_5 = arith.constant 0 : index
    %11 = vector.load %arg3[%c0_4, %c0_5] : memref<16x128xf32, #tpu.memory_space<vmem>>, vector<16x128xf32>
    tpu.vector_store %arg3[%c0_4, %c0_5], %10 {strides = array<i32>} : memref<16x128xf32, #tpu.memory_space<vmem>>, vector<16x128xf32>,
    return
  }
  func.func @transform_0(%arg0: i32) -> (i32, i32) {
    %c0_i32 = arith.constant 0 : i32
    %c0_i32_0 = arith.constant 0 : i32
    return %c0_i32, %arg0 : i32, i32
  }
  func.func @transform_1(%arg0: i32) -> (i32, i32) {
    %c0_i32 = arith.constant 0 : i32
    %c0_i32_0 = arith.constant 0 : i32
    return %c0_i32, %arg0 : i32, i32
  }
  func.func @transform_2(%arg0: i32) -> (i32, i32) {
    %c0_i32 = arith.constant 0 : i32
    %c0_i32_0 = arith.constant 0 : i32
    return %c0_i32, %arg0 : i32, i32
  }
}

module attributes {stable_mosaic.version = 11 : i64} {
  func.func @_conv_stats_kernel(%arg0: i32, %arg1: memref<16x144xbf16, #tpu.memory_space<vmem>>, %arg2: memref<144x128xbf16, #tpu.memory_space<vmem>>, %arg3: memref<16x128xf32, #tpu.memory_space<vmem>>, %arg4: memref<16x128xf32, #tpu.memory_space<vmem>>, %arg5: memref<16x128xf32, #tpu.memory_space<vmem>>) attributes {dimension_semantics = [#tpu.dimension_semantics<parallel>], iteration_bounds = array<i64: 1>, scalar_prefetch = 0 : i64, scratch_operands = 0 : i64, tpu.core_type = #tpu.core_type<tc>, window_params = [{pipeline_mode = #tpu.pipeline_mode<synchronous>, transform_indices = @transform_0, window_bounds = array<i64: 16, 144>}, {transform_indices = @transform_1, window_bounds = array<i64: 144, 128>}, {transform_indices = @transform_2, window_bounds = array<i64: 16, 128>}, {transform_indices = @transform_3, window_bounds = array<i64: 16, 128>}, {transform_indices = @transform_4, window_bounds = array<i64: 16, 128>}]} {
    %c0 = arith.constant 0 : index
    %c0_0 = arith.constant 0 : index
    %0 = vector.load %arg1[%c0, %c0_0] : memref<16x144xbf16, #tpu.memory_space<vmem>>, vector<16x144xbf16>
    %c0_1 = arith.constant 0 : index
    %c0_2 = arith.constant 0 : index
    %1 = vector.load %arg2[%c0_1, %c0_2] : memref<144x128xbf16, #tpu.memory_space<vmem>>, vector<144x128xbf16>
    %cst = arith.constant dense<0.000000e+00> : vector<16x128xf32>
    %2 = tpu.matmul %0, %1, %cst {dimension_numbers = #tpu.dot_dimension_numbers<[1], [0], [0], [1], [0, 0, 1, 1], [], []>} : vector<16x144xbf16>, vector<144x128xbf16>, vector<16x128xf32> -> vector<16x128xf32>
    %c0_3 = arith.constant 0 : index
    %c0_4 = arith.constant 0 : index
    %3 = vector.load %arg3[%c0_3, %c0_4] : memref<16x128xf32, #tpu.memory_space<vmem>>, vector<16x128xf32>
    tpu.vector_store %arg3[%c0_3, %c0_4], %2 {strides = array<i32>} : memref<16x128xf32, #tpu.memory_space<vmem>>, vector<16x128xf32>,
    %cst_5 = arith.constant dense<0.000000e+00> : vector<16xf32>
    %4 = vector.multi_reduction <add>, %2, %cst_5 [1] : vector<16x128xf32> to vector<16xf32>
    %5 = vector.shape_cast %4 : vector<16xf32> to vector<16x1xf32>
    %6 = vector.shape_cast %5 : vector<16x1xf32> to vector<16x1xf32>
    %7 = vector.broadcast %6 : vector<16x1xf32> to vector<16x128xf32>
    %c0_6 = arith.constant 0 : index
    %c0_7 = arith.constant 0 : index
    %8 = vector.load %arg4[%c0_6, %c0_7] : memref<16x128xf32, #tpu.memory_space<vmem>>, vector<16x128xf32>
    tpu.vector_store %arg4[%c0_6, %c0_7], %7 {strides = array<i32>} : memref<16x128xf32, #tpu.memory_space<vmem>>, vector<16x128xf32>,
    %9 = arith.mulf %2, %2 : vector<16x128xf32>
    %cst_8 = arith.constant dense<0.000000e+00> : vector<16xf32>
    %10 = vector.multi_reduction <add>, %9, %cst_8 [1] : vector<16x128xf32> to vector<16xf32>
    %11 = vector.shape_cast %10 : vector<16xf32> to vector<16x1xf32>
    %12 = vector.shape_cast %11 : vector<16x1xf32> to vector<16x1xf32>
    %13 = vector.broadcast %12 : vector<16x1xf32> to vector<16x128xf32>
    %c0_9 = arith.constant 0 : index
    %c0_10 = arith.constant 0 : index
    %14 = vector.load %arg5[%c0_9, %c0_10] : memref<16x128xf32, #tpu.memory_space<vmem>>, vector<16x128xf32>
    tpu.vector_store %arg5[%c0_9, %c0_10], %13 {strides = array<i32>} : memref<16x128xf32, #tpu.memory_space<vmem>>, vector<16x128xf32>,
    return
  }
  func.func @transform_0(%arg0: i32) -> (i32, i32) {
    %c0_i32 = arith.constant 0 : i32
    %c0_i32_0 = arith.constant 0 : i32
    %c0_i32_1 = arith.constant 0 : i32
    return %c0_i32, %c0_i32_0 : i32, i32
  }
  func.func @transform_1(%arg0: i32) -> (i32, i32) {
    %c0_i32 = arith.constant 0 : i32
    %c0_i32_0 = arith.constant 0 : i32
    return %c0_i32, %arg0 : i32, i32
  }
  func.func @transform_2(%arg0: i32) -> (i32, i32) {
    %c0_i32 = arith.constant 0 : i32
    %c0_i32_0 = arith.constant 0 : i32
    return %c0_i32, %arg0 : i32, i32
  }
  func.func @transform_3(%arg0: i32) -> (i32, i32) {
    %c0_i32 = arith.constant 0 : i32
    %c0_i32_0 = arith.constant 0 : i32
    return %c0_i32, %arg0 : i32, i32
  }
  func.func @transform_4(%arg0: i32) -> (i32, i32) {
    %c0_i32 = arith.constant 0 : i32
    %c0_i32_0 = arith.constant 0 : i32
    return %c0_i32, %arg0 : i32, i32
  }
}

module attributes {stable_mosaic.version = 11 : i64} {
  func.func @_conv_stats_kernel(%arg0: i32, %arg1: memref<8x180xbf16, #tpu.memory_space<vmem>>, %arg2: memref<180x128xbf16, #tpu.memory_space<vmem>>, %arg3: memref<8x128xf32, #tpu.memory_space<vmem>>, %arg4: memref<8x128xf32, #tpu.memory_space<vmem>>, %arg5: memref<8x128xf32, #tpu.memory_space<vmem>>) attributes {dimension_semantics = [#tpu.dimension_semantics<parallel>], iteration_bounds = array<i64: 1>, scalar_prefetch = 0 : i64, scratch_operands = 0 : i64, tpu.core_type = #tpu.core_type<tc>, window_params = [{pipeline_mode = #tpu.pipeline_mode<synchronous>, transform_indices = @transform_0, window_bounds = array<i64: 8, 180>}, {transform_indices = @transform_1, window_bounds = array<i64: 180, 128>}, {transform_indices = @transform_2, window_bounds = array<i64: 8, 128>}, {transform_indices = @transform_3, window_bounds = array<i64: 8, 128>}, {transform_indices = @transform_4, window_bounds = array<i64: 8, 128>}]} {
    %c0 = arith.constant 0 : index
    %c0_0 = arith.constant 0 : index
    %0 = vector.load %arg1[%c0, %c0_0] : memref<8x180xbf16, #tpu.memory_space<vmem>>, vector<8x180xbf16>
    %c0_1 = arith.constant 0 : index
    %c0_2 = arith.constant 0 : index
    %1 = vector.load %arg2[%c0_1, %c0_2] : memref<180x128xbf16, #tpu.memory_space<vmem>>, vector<180x128xbf16>
    %cst = arith.constant dense<0.000000e+00> : vector<8x128xf32>
    %2 = tpu.matmul %0, %1, %cst {dimension_numbers = #tpu.dot_dimension_numbers<[1], [0], [0], [1], [0, 0, 1, 1], [], []>} : vector<8x180xbf16>, vector<180x128xbf16>, vector<8x128xf32> -> vector<8x128xf32>
    %c0_3 = arith.constant 0 : index
    %c0_4 = arith.constant 0 : index
    %3 = vector.load %arg3[%c0_3, %c0_4] : memref<8x128xf32, #tpu.memory_space<vmem>>, vector<8x128xf32>
    tpu.vector_store %arg3[%c0_3, %c0_4], %2 {strides = array<i32>} : memref<8x128xf32, #tpu.memory_space<vmem>>, vector<8x128xf32>,
    %cst_5 = arith.constant dense<0.000000e+00> : vector<8xf32>
    %4 = vector.multi_reduction <add>, %2, %cst_5 [1] : vector<8x128xf32> to vector<8xf32>
    %5 = vector.shape_cast %4 : vector<8xf32> to vector<8x1xf32>
    %6 = vector.shape_cast %5 : vector<8x1xf32> to vector<8x1xf32>
    %7 = vector.broadcast %6 : vector<8x1xf32> to vector<8x128xf32>
    %c0_6 = arith.constant 0 : index
    %c0_7 = arith.constant 0 : index
    %8 = vector.load %arg4[%c0_6, %c0_7] : memref<8x128xf32, #tpu.memory_space<vmem>>, vector<8x128xf32>
    tpu.vector_store %arg4[%c0_6, %c0_7], %7 {strides = array<i32>} : memref<8x128xf32, #tpu.memory_space<vmem>>, vector<8x128xf32>,
    %9 = arith.mulf %2, %2 : vector<8x128xf32>
    %cst_8 = arith.constant dense<0.000000e+00> : vector<8xf32>
    %10 = vector.multi_reduction <add>, %9, %cst_8 [1] : vector<8x128xf32> to vector<8xf32>
    %11 = vector.shape_cast %10 : vector<8xf32> to vector<8x1xf32>
    %12 = vector.shape_cast %11 : vector<8x1xf32> to vector<8x1xf32>
    %13 = vector.broadcast %12 : vector<8x1xf32> to vector<8x128xf32>
    %c0_9 = arith.constant 0 : index
    %c0_10 = arith.constant 0 : index
    %14 = vector.load %arg5[%c0_9, %c0_10] : memref<8x128xf32, #tpu.memory_space<vmem>>, vector<8x128xf32>
    tpu.vector_store %arg5[%c0_9, %c0_10], %13 {strides = array<i32>} : memref<8x128xf32, #tpu.memory_space<vmem>>, vector<8x128xf32>,
    return
  }
  func.func @transform_0(%arg0: i32) -> (i32, i32) {
    %c0_i32 = arith.constant 0 : i32
    %c0_i32_0 = arith.constant 0 : i32
    %c0_i32_1 = arith.constant 0 : i32
    return %c0_i32, %c0_i32_0 : i32, i32
  }
  func.func @transform_1(%arg0: i32) -> (i32, i32) {
    %c0_i32 = arith.constant 0 : i32
    %c0_i32_0 = arith.constant 0 : i32
    return %c0_i32, %arg0 : i32, i32
  }
  func.func @transform_2(%arg0: i32) -> (i32, i32) {
    %c0_i32 = arith.constant 0 : i32
    %c0_i32_0 = arith.constant 0 : i32
    return %c0_i32, %arg0 : i32, i32
  }
  func.func @transform_3(%arg0: i32) -> (i32, i32) {
    %c0_i32 = arith.constant 0 : i32
    %c0_i32_0 = arith.constant 0 : i32
    return %c0_i32, %arg0 : i32, i32
  }
  func.func @transform_4(%arg0: i32) -> (i32, i32) {
    %c0_i32 = arith.constant 0 : i32
    %c0_i32_0 = arith.constant 0 : i32
    return %c0_i32, %arg0 : i32, i32
  }
}

module attributes {stable_mosaic.version = 11 : i64} {
  func.func @_conv_stats_kernel(%arg0: i32, %arg1: memref<8x8xbf16, #tpu.memory_space<vmem>>, %arg2: memref<8x128xbf16, #tpu.memory_space<vmem>>, %arg3: memref<8x128xf32, #tpu.memory_space<vmem>>, %arg4: memref<8x128xf32, #tpu.memory_space<vmem>>, %arg5: memref<8x128xf32, #tpu.memory_space<vmem>>) attributes {dimension_semantics = [#tpu.dimension_semantics<parallel>], iteration_bounds = array<i64: 1>, scalar_prefetch = 0 : i64, scratch_operands = 0 : i64, tpu.core_type = #tpu.core_type<tc>, window_params = [{pipeline_mode = #tpu.pipeline_mode<synchronous>, transform_indices = @transform_0, window_bounds = array<i64: 8, 8>}, {transform_indices = @transform_1, window_bounds = array<i64: 8, 128>}, {transform_indices = @transform_2, window_bounds = array<i64: 8, 128>}, {transform_indices = @transform_3, window_bounds = array<i64: 8, 128>}, {transform_indices = @transform_4, window_bounds = array<i64: 8, 128>}]} {
    %c0 = arith.constant 0 : index
    %c0_0 = arith.constant 0 : index
    %0 = vector.load %arg1[%c0, %c0_0] : memref<8x8xbf16, #tpu.memory_space<vmem>>, vector<8x8xbf16>
    %c0_1 = arith.constant 0 : index
    %c0_2 = arith.constant 0 : index
    %1 = vector.load %arg2[%c0_1, %c0_2] : memref<8x128xbf16, #tpu.memory_space<vmem>>, vector<8x128xbf16>
    %cst = arith.constant dense<0.000000e+00> : vector<8x128xf32>
    %2 = tpu.matmul %0, %1, %cst {dimension_numbers = #tpu.dot_dimension_numbers<[1], [0], [0], [1], [0, 0, 1, 1], [], []>} : vector<8x8xbf16>, vector<8x128xbf16>, vector<8x128xf32> -> vector<8x128xf32>
    %c0_3 = arith.constant 0 : index
    %c0_4 = arith.constant 0 : index
    %3 = vector.load %arg3[%c0_3, %c0_4] : memref<8x128xf32, #tpu.memory_space<vmem>>, vector<8x128xf32>
    tpu.vector_store %arg3[%c0_3, %c0_4], %2 {strides = array<i32>} : memref<8x128xf32, #tpu.memory_space<vmem>>, vector<8x128xf32>,
    %cst_5 = arith.constant dense<0.000000e+00> : vector<8xf32>
    %4 = vector.multi_reduction <add>, %2, %cst_5 [1] : vector<8x128xf32> to vector<8xf32>
    %5 = vector.shape_cast %4 : vector<8xf32> to vector<8x1xf32>
    %6 = vector.shape_cast %5 : vector<8x1xf32> to vector<8x1xf32>
    %7 = vector.broadcast %6 : vector<8x1xf32> to vector<8x128xf32>
    %c0_6 = arith.constant 0 : index
    %c0_7 = arith.constant 0 : index
    %8 = vector.load %arg4[%c0_6, %c0_7] : memref<8x128xf32, #tpu.memory_space<vmem>>, vector<8x128xf32>
    tpu.vector_store %arg4[%c0_6, %c0_7], %7 {strides = array<i32>} : memref<8x128xf32, #tpu.memory_space<vmem>>, vector<8x128xf32>,
    %9 = arith.mulf %2, %2 : vector<8x128xf32>
    %cst_8 = arith.constant dense<0.000000e+00> : vector<8xf32>
    %10 = vector.multi_reduction <add>, %9, %cst_8 [1] : vector<8x128xf32> to vector<8xf32>
    %11 = vector.shape_cast %10 : vector<8xf32> to vector<8x1xf32>
    %12 = vector.shape_cast %11 : vector<8x1xf32> to vector<8x1xf32>
    %13 = vector.broadcast %12 : vector<8x1xf32> to vector<8x128xf32>
    %c0_9 = arith.constant 0 : index
    %c0_10 = arith.constant 0 : index
    %14 = vector.load %arg5[%c0_9, %c0_10] : memref<8x128xf32, #tpu.memory_space<vmem>>, vector<8x128xf32>
    tpu.vector_store %arg5[%c0_9, %c0_10], %13 {strides = array<i32>} : memref<8x128xf32, #tpu.memory_space<vmem>>, vector<8x128xf32>,
    return
  }
  func.func @transform_0(%arg0: i32) -> (i32, i32) {
    %c0_i32 = arith.constant 0 : i32
    %c0_i32_0 = arith.constant 0 : i32
    %c0_i32_1 = arith.constant 0 : i32
    return %c0_i32, %c0_i32_0 : i32, i32
  }
  func.func @transform_1(%arg0: i32) -> (i32, i32) {
    %c0_i32 = arith.constant 0 : i32
    %c0_i32_0 = arith.constant 0 : i32
    return %c0_i32, %arg0 : i32, i32
  }
  func.func @transform_2(%arg0: i32) -> (i32, i32) {
    %c0_i32 = arith.constant 0 : i32
    %c0_i32_0 = arith.constant 0 : i32
    return %c0_i32, %arg0 : i32, i32
  }
  func.func @transform_3(%arg0: i32) -> (i32, i32) {
    %c0_i32 = arith.constant 0 : i32
    %c0_i32_0 = arith.constant 0 : i32
    return %c0_i32, %arg0 : i32, i32
  }
  func.func @transform_4(%arg0: i32) -> (i32, i32) {
    %c0_i32 = arith.constant 0 : i32
    %c0_i32_0 = arith.constant 0 : i32
    return %c0_i32, %arg0 : i32, i32
  }
}

module attributes {stable_mosaic.version = 11 : i64} {
  func.func @_conv_bias_sigmoid_kernel(%arg0: i32, %arg1: memref<3x8xbf16, #tpu.memory_space<vmem>>, %arg2: memref<8x512xbf16, #tpu.memory_space<vmem>>, %arg3: memref<3x1xf32, #tpu.memory_space<vmem>>, %arg4: memref<3x512xf32, #tpu.memory_space<vmem>>) attributes {dimension_semantics = [#tpu.dimension_semantics<parallel>], iteration_bounds = array<i64: 1>, scalar_prefetch = 0 : i64, scratch_operands = 0 : i64, tpu.core_type = #tpu.core_type<tc>, window_params = [{pipeline_mode = #tpu.pipeline_mode<synchronous>, transform_indices = @transform_0, window_bounds = array<i64: 3, 8>}, {transform_indices = @transform_1, window_bounds = array<i64: 8, 512>}, {pipeline_mode = #tpu.pipeline_mode<synchronous>, transform_indices = @transform_2, window_bounds = array<i64: 3, 1>}, {transform_indices = @transform_3, window_bounds = array<i64: 3, 512>}]} {
    %c0 = arith.constant 0 : index
    %c0_0 = arith.constant 0 : index
    %0 = vector.load %arg1[%c0, %c0_0] : memref<3x8xbf16, #tpu.memory_space<vmem>>, vector<3x8xbf16>
    %c0_1 = arith.constant 0 : index
    %c0_2 = arith.constant 0 : index
    %1 = vector.load %arg2[%c0_1, %c0_2] : memref<8x512xbf16, #tpu.memory_space<vmem>>, vector<8x512xbf16>
    %cst = arith.constant dense<0.000000e+00> : vector<3x512xf32>
    %2 = tpu.matmul %0, %1, %cst {dimension_numbers = #tpu.dot_dimension_numbers<[1], [0], [0], [1], [0, 0, 1, 1], [], []>} : vector<3x8xbf16>, vector<8x512xbf16>, vector<3x512xf32> -> vector<3x512xf32>
    %c0_3 = arith.constant 0 : index
    %c0_4 = arith.constant 0 : index
    %3 = vector.load %arg3[%c0_3, %c0_4] : memref<3x1xf32, #tpu.memory_space<vmem>>, vector<3x1xf32>
    %4 = vector.broadcast %3 : vector<3x1xf32> to vector<3x512xf32>
    %5 = arith.addf %2, %4 : vector<3x512xf32>
    %6 = arith.negf %5 : vector<3x512xf32>
    %7 = math.exp %6 : vector<3x512xf32>
    %cst_5 = arith.constant 1.000000e+00 : f32
    %8 = vector.broadcast %cst_5 : f32 to vector<3x512xf32>
    %9 = arith.addf %8, %7 : vector<3x512xf32>
    %10 = arith.divf %8, %9 : vector<3x512xf32>
    %c0_6 = arith.constant 0 : index
    %c0_7 = arith.constant 0 : index
    %11 = vector.load %arg4[%c0_6, %c0_7] : memref<3x512xf32, #tpu.memory_space<vmem>>, vector<3x512xf32>
    tpu.vector_store %arg4[%c0_6, %c0_7], %10 {strides = array<i32>} : memref<3x512xf32, #tpu.memory_space<vmem>>, vector<3x512xf32>,
    return
  }
  func.func @transform_0(%arg0: i32) -> (i32, i32) {
    %c0_i32 = arith.constant 0 : i32
    %c0_i32_0 = arith.constant 0 : i32
    %c0_i32_1 = arith.constant 0 : i32
    return %c0_i32, %c0_i32_0 : i32, i32
  }
  func.func @transform_1(%arg0: i32) -> (i32, i32) {
    %c0_i32 = arith.constant 0 : i32
    %c0_i32_0 = arith.constant 0 : i32
    return %c0_i32, %arg0 : i32, i32
  }
  func.func @transform_2(%arg0: i32) -> (i32, i32) {
    %c0_i32 = arith.constant 0 : i32
    %c0_i32_0 = arith.constant 0 : i32
    %c0_i32_1 = arith.constant 0 : i32
    return %c0_i32, %c0_i32_0 : i32, i32
  }
  func.func @transform_3(%arg0: i32) -> (i32, i32) {
    %c0_i32 = arith.constant 0 : i32
    %c0_i32_0 = arith.constant 0 : i32
    return %c0_i32, %arg0 : i32, i32
  }
}

</mosaic_0001>

<bundles_post_ra>
// kernel: skip_architecture.25
= control target key start
LH: loop header
LB: loop body
LE: loop exit
PB: predicated region body
PF: predicated region fallthrough
CT: control target
= control target key end

     0   :  { %v39_v0 = vmov 0   ;;  %s72_s1 = inlined_call_operand.vmem [shape: f32[8,1], index: 1, kind: input, shape index: {}]   ;;  %s73_s2 = inlined_call_operand.vmem [shape: f32[8,1], index: 2, kind: input, shape index: {}]   ;;  %s74_s0 = inlined_call_operand.vmem [shape: f32[8,128], index: 0, kind: input, shape index: {}]   ;;  %s75_s3 = inlined_call_operand.vmem [shape: f32[8,128], index: 3, kind: output, shape index: {}]  }
   0x1   :  { %38 = vset.pattern.permute.xlu0 %v39_v0  ;;  %v15_v1 = vld [vmem:[%s72_s1] sm:$0xff] }
   0x2   :  { %18 = vperm.xlu0 %38, %v15_v1   ;;  %v22_v2 = vld [vmem:[%s73_s2] sm:$0xff] }
   0x3   :  { %v14_v4 = vld [vmem:[%s74_s0] sm:$0xff] }
   0x6   :  { %25 = vperm.xlu0 %38, %v22_v2  }
  0x7d   :  { %v19_v3 = vpop.permute.xlu0 %18 }
  0x7e   :  { %v21_v5 = vmul.f32 %v19_v3, %v14_v4 }
  0x81   :  { %v26_v6 = vpop.permute.xlu0 %25 }
  0x82   :  { %v28_v7 = vadd.f32 %v26_v6, %v21_v5 }
  0x84   :  { %vm29_vm0 = vcmp.ge.f32.partialorder %v28_v7, 0.0  ;;  %v30_v8 = vmul.f32 0.2, %v28_v7 }
  0x86   :  { %v31_v9 = vsel %vm29_vm0, %v28_v7, %v30_v8 }
  0x87   :  { %32 = vst [vmem:[%s75_s3] sm:$0xff] %v31_v9 }

// kernel: skip_architecture.24
= control target key start
LH: loop header
LB: loop body
LE: loop exit
PB: predicated region body
PF: predicated region fallthrough
CT: control target
= control target key end

     0   :  { %vm35_vm0 = vcmask 1044480   ;;  %vm36_vm1 = vcmask 1045504   ;;  %v121_v0 = vmov 0.0   ;;  %v122_v2 = vmov 65535   ;;  %s167_s1 = inlined_call_operand.vmem [shape: bf16[27,128], index: 1, kind: input, shape index: {}]   ;;  %s168_s0 = inlined_call_operand.vmem [shape: bf16[8,27], index: 0, kind: input, shape index: {}]   ;;  %s169_s2 = inlined_call_operand.vmem [shape: f32[8,128], index: 2, kind: output, shape index: {0}]   ;;  %s170_s3 = inlined_call_operand.vmem [shape: f32[8,128], index: 3, kind: output, shape index: {1}]   ;;  %s171_s4 = inlined_call_operand.vmem [shape: f32[8,128], index: 4, kind: output, shape index: {2}]  }
   0x1   :  { %108 = vmatprep.subr.bf16.mxu0 %v121_v0  ;;  %v119_v1 = vld [vmem:[%s167_s1 + $0x8] sm:$0x3f]   ;;  %v37_v3 = vsel %vm35_vm0, 4294967295, %v122_v2  ;;  %vm123_vm2 = vmmov 0   ;;  %v120_v6 = vld [vmem:[%s167_s1] sm:$0xff]   ;;  %vm31_vm3 = vcmask 220160  }
   0x2   :  { %v38_v4 = vsel %vm36_vm1, %v37_v3, 0  ;;  %112 = vmatprep.mubr.msk.bf16.mxu0 %vm123_vm2, %v121_v0  ;;  %v15_v7 = vld [vmem:[%s168_s0] sm:$0xf] }
   0x3   :  { %v40_v5 = vand.u32 %v119_v1, %v38_v4 }
   0x5   :  { %109 = vmatpush3.bf16.msra.mxu0 %v40_v5 }
   0x6   :  { %110 = vmatprep.subr.bf16.mxu0 %v121_v0 }
   0x9   :  { %111 = vmatpush3.bf16.msra.mxu0 %v120_v6 }
   0xc   :  { %113 = vmatmul.mubr.msk.bf16.vlgmr.msra.gmra.mxu0 %vm31_vm3, %v15_v7 }
  0xcc   :  { %v76_v8 = vpop.f32.mrf.mxu0 }
  0xcd   :  { %82 = vst [vmem:[%s169_s2] sm:$0xff] %v76_v8  ;;  %83 = vadd.xlane.f32.xlu0 %v76_v8  ;;  %v86_v10 = vmul.f32 %v76_v8, %v76_v8 }
  0xce   :  { %v114_v9 = vpop.f32.mrf.mxu0 }
  0xd0   :  { %v79_v11 = vpop.f32.mrf.mxu0 }
  0xd1   :  { %87 = vadd.xlane.f32.xlu0 %v86_v10 }
  0xd2   :  { %v115_v12 = vpop.f32.mrf.mxu0 }
 0x156   :  { %v84_v13 = vpop.xlane.xlu0 %83 }
 0x157   :  { %85 = vst [vmem:[%s170_s3] sm:$0xff] %v84_v13 }
 0x15a   :  { %v88_v14 = vpop.xlane.xlu0 %87 }
 0x15b   :  { %89 = vst [vmem:[%s171_s4] sm:$0xff] %v88_v14 }

// kernel: skip_architecture.26
= control target key start
LH: loop header
LB: loop body
LE: loop exit
PB: predicated region body
PF: predicated region fallthrough
CT: control target
= control target key end

     0   :  { %vm56_vm0 = vcmask 1043456   ;;  %v153_v0 = vmov 0.0   ;;  %vm154_vm1 = vmmov 0   ;;  %vm52_vm2 = vcmask 588800   ;;  %s207_s1 = inlined_call_operand.vmem [shape: bf16[72,128], index: 1, kind: input, shape index: {}]   ;;  %s208_s0 = inlined_call_operand.vmem [shape: bf16[8,72], index: 0, kind: input, shape index: {}]   ;;  %s209_s2 = inlined_call_operand.vmem [shape: f32[8,128], index: 2, kind: output, shape index: {0}]   ;;  %s210_s3 = inlined_call_operand.vmem [shape: f32[8,128], index: 3, kind: output, shape index: {1}]   ;;  %s211_s4 = inlined_call_operand.vmem [shape: f32[8,128], index: 4, kind: output, shape index: {2}]  }
   0x1   :  { %132 = vmatprep.subr.bf16.mxu0 %v153_v0  ;;  %v148_v1 = vld [vmem:[%s207_s1 + $0x20] ss:$0 sps:$4 sm:$0xff]   ;;  %142 = vmatprep.mubr.msk.bf16.mxu0 %vm154_vm1, %v153_v0  ;;  %v149_v3 = vld [vmem:[%s207_s1 + $0x18] sm:$0xff]   ;;  %v150_v4 = vld [vmem:[%s207_s1 + $0x10] sm:$0xff]  }
   0x2   :  { %v58_v2 = vsel %vm56_vm0, %v148_v1, 0  ;;  %v151_v5 = vld [vmem:[%s207_s1 + $0x8] sm:$0xff]   ;;  %v152_v6 = vld [vmem:[%s207_s1] sm:$0xff]  }
   0x3   :  { %133 = vmatpush3.bf16.msra.mxu0 %v58_v2  ;;  %v15_v7 = vld [vmem:[%s208_s0] sm:$0xf] }
   0x4   :  { %134 = vmatprep.subr.bf16.mxu0 %v153_v0 }
   0x7   :  { %135 = vmatpush3.bf16.msra.mxu0 %v149_v3 }
   0x8   :  { %136 = vmatprep.subr.bf16.mxu0 %v153_v0 }
   0xb   :  { %137 = vmatpush3.bf16.msra.mxu0 %v150_v4 }
   0xc   :  { %138 = vmatprep.subr.bf16.mxu0 %v153_v0 }
   0xf   :  { %139 = vmatpush3.bf16.msra.mxu0 %v151_v5 }
  0x10   :  { %140 = vmatprep.subr.bf16.mxu0 %v153_v0 }
  0x13   :  { %141 = vmatpush3.bf16.msra.mxu0 %v152_v6 }
  0x16   :  { %143 = vmatmul.mubr.msk.bf16.vlgmr.msra.gmra.mxu0 %vm52_vm2, %v15_v7 }
  0xd6   :  { %v94_v8 = vpop.f32.mrf.mxu0 }
  0xd7   :  { %100 = vst [vmem:[%s209_s2] sm:$0xff] %v94_v8  ;;  %101 = vadd.xlane.f32.xlu0 %v94_v8  ;;  %v104_v10 = vmul.f32 %v94_v8, %v94_v8 }
  0xd8   :  { %v144_v9 = vpop.f32.mrf.mxu0 }
  0xda   :  { %v97_v11 = vpop.f32.mrf.mxu0 }
  0xdb   :  { %105 = vadd.xlane.f32.xlu0 %v104_v10 }
  0xdc   :  { %v145_v12 = vpop.f32.mrf.mxu0 }
 0x160   :  { %v102_v13 = vpop.xlane.xlu0 %101 }
 0x161   :  { %103 = vst [vmem:[%s210_s3] sm:$0xff] %v102_v13 }
 0x164   :  { %v106_v14 = vpop.xlane.xlu0 %105 }
 0x165   :  { %107 = vst [vmem:[%s211_s4] sm:$0xff] %v106_v14 }

// kernel: skip_architecture.28
= control target key start
LH: loop header
LB: loop body
LE: loop exit
PB: predicated region body
PF: predicated region fallthrough
CT: control target
= control target key end

     0   :  { %vm21_vm0 = vcmask 1043456   ;;  %v98_v0 = vmov 0.0   ;;  %vm99_vm1 = vmmov 0   ;;  %vm17_vm2 = vcmask 64512   ;;  %s143_s1 = inlined_call_operand.vmem [shape: bf16[8,128], index: 1, kind: input, shape index: {}]   ;;  %s144_s0 = inlined_call_operand.vmem [shape: bf16[4,8], index: 0, kind: input, shape index: {}]   ;;  %s145_s2 = inlined_call_operand.vmem [shape: f32[4,128], index: 2, kind: output, shape index: {0}]   ;;  %s146_s3 = inlined_call_operand.vmem [shape: f32[4,128], index: 3, kind: output, shape index: {1}]   ;;  %s147_s4 = inlined_call_operand.vmem [shape: f32[4,128], index: 4, kind: output, shape index: {2}]  }
   0x1   :  { %90 = vmatprep.subr.bf16.mxu0 %v98_v0  ;;  %v16_v1 = vld [vmem:[%s143_s1] sm:$0xf]  ;;  %92 = vmatprep.mubr.msk.bf16.mxu0 %vm99_vm1, %v98_v0 }
   0x2   :  { %v23_v2 = vsel %vm21_vm0, %v16_v1, 0  ;;  %v15_v3 = vld [vmem:[%s144_s0] sm:$0x3] }
   0x3   :  { %91 = vmatpush3.bf16.msra.mxu0 %v23_v2 }
   0x6   :  { %93 = vmatmul.mubr.msk.bf16.vlgmr.msra.gmra.mxu0 %vm17_vm2, %v15_v3 }
  0xc6   :  { %v59_v4 = vpop.f32.mrf.mxu0 }
  0xc7   :  { %65 = vst [vmem:[%s145_s2] sm:$0xf] %v59_v4  ;;  %v66_v5 = vsel %vm21_vm0, %v59_v4, 0.0  ;;  %v70_v6 = vmul.f32 %v59_v4, %v59_v4 }
  0xc8   :  { %67 = vadd.xlane.f32.xlu0 %v66_v5  ;;  %v94_v7 = vpop.f32.mrf.mxu0 }
  0xc9   :  { %v71_v9 = vsel %vm21_vm0, %v70_v6, 0.0 }
  0xca   :  { %v62_v8 = vpop.f32.mrf.mxu0 }
  0xcc   :  { %72 = vadd.xlane.f32.xlu0 %v71_v9  ;;  %v95_v10 = vpop.f32.mrf.mxu0 }
 0x151   :  { %v68_v11 = vpop.xlane.xlu0 %67 }
 0x152   :  { %69 = vst [vmem:[%s146_s3] sm:$0xf] %v68_v11 }
 0x155   :  { %v73_v12 = vpop.xlane.xlu0 %72 }
 0x156   :  { %74 = vst [vmem:[%s147_s4] sm:$0xf] %v73_v12 }

// kernel: skip_architecture.29
= control target key start
LH: loop header
LB: loop body
LE: loop exit
PB: predicated region body
PF: predicated region fallthrough
CT: control target
= control target key end

     0   :  { %v39_v0 = vmov 0   ;;  %s72_s1 = inlined_call_operand.vmem [shape: f32[4,1], index: 1, kind: input, shape index: {}]   ;;  %s73_s2 = inlined_call_operand.vmem [shape: f32[4,1], index: 2, kind: input, shape index: {}]   ;;  %s74_s0 = inlined_call_operand.vmem [shape: f32[4,128], index: 0, kind: input, shape index: {}]   ;;  %s75_s3 = inlined_call_operand.vmem [shape: f32[4,128], index: 3, kind: output, shape index: {}]  }
   0x1   :  { %38 = vset.pattern.permute.xlu0 %v39_v0  ;;  %v15_v1 = vld [vmem:[%s72_s1] sm:$0xf] }
   0x2   :  { %18 = vperm.xlu0 %38, %v15_v1   ;;  %v22_v2 = vld [vmem:[%s73_s2] sm:$0xf] }
   0x3   :  { %v14_v4 = vld [vmem:[%s74_s0] sm:$0xf] }
   0x6   :  { %25 = vperm.xlu0 %38, %v22_v2  }
  0x7d   :  { %v19_v3 = vpop.permute.xlu0 %18 }
  0x7e   :  { %v21_v5 = vmul.f32 %v19_v3, %v14_v4 }
  0x81   :  { %v26_v6 = vpop.permute.xlu0 %25 }
  0x82   :  { %v28_v7 = vadd.f32 %v26_v6, %v21_v5 }
  0x84   :  { %vm29_vm0 = vcmp.ge.f32.partialorder %v28_v7, 0.0  ;;  %v30_v8 = vmul.f32 0.2, %v28_v7 }
  0x86   :  { %v31_v9 = vsel %vm29_vm0, %v28_v7, %v30_v8 }
  0x87   :  { %32 = vst [vmem:[%s75_s3] sm:$0xf] %v31_v9 }

// kernel: skip_architecture.42
= control target key start
LH: loop header
LB: loop body
LE: loop exit
PB: predicated region body
PF: predicated region fallthrough
CT: control target
= control target key end

     0   :  { %vm11_vm0 = vcmask 1043456   ;;  %s53_s0 = inlined_call_operand.vmem [shape: f32[4,128], index: 0, kind: input, shape index: {}]   ;;  %s54_s1 = inlined_call_operand.vmem [shape: f32[4,128], index: 1, kind: output, shape index: {0}]   ;;  %s55_s2 = inlined_call_operand.vmem [shape: f32[4,128], index: 2, kind: output, shape index: {1}]  }
   0x1   :  { %v10_v0 = vld [vmem:[%s53_s0] sm:$0xf] }
   0x2   :  { %v12_v1 = vsel %vm11_vm0, %v10_v0, 0.0  ;;  %v16_v2 = vmul.f32 %v10_v0, %v10_v0 }
   0x3   :  { %13 = vadd.xlane.f32.xlu0 %v12_v1 }
   0x4   :  { %v17_v3 = vsel %vm11_vm0, %v16_v2, 0.0 }
   0x7   :  { %18 = vadd.xlane.f32.xlu0 %v17_v3 }
  0x8c   :  { %v14_v4 = vpop.xlane.xlu0 %13 }
  0x8d   :  { %15 = vst [vmem:[%s54_s1] sm:$0xf] %v14_v4 }
  0x90   :  { %v19_v5 = vpop.xlane.xlu0 %18 }
  0x91   :  { %20 = vst [vmem:[%s55_s2] sm:$0xf] %v19_v5 }

// kernel: skip_architecture.30
= control target key start
LH: loop header
LB: loop body
LE: loop exit
PB: predicated region body
PF: predicated region fallthrough
CT: control target
= control target key end

     0   :  { %vm62_vm0 = vcmask 1043456   ;;  %v170_v0 = vmov 0.0   ;;  %vm171_vm1 = vmmov 0   ;;  %vm58_vm2 = vcmask 588800   ;;  %s233_s1 = inlined_call_operand.vmem [shape: bf16[72,128], index: 1, kind: input, shape index: {}]   ;;  %s234_s0 = inlined_call_operand.vmem [shape: bf16[16,72], index: 0, kind: input, shape index: {}]   ;;  %s235_s2 = inlined_call_operand.vmem [shape: f32[16,128], index: 2, kind: output, shape index: {0}]   ;;  %s236_s3 = inlined_call_operand.vmem [shape: f32[16,128], index: 3, kind: output, shape index: {1}]   ;;  %s237_s4 = inlined_call_operand.vmem [shape: f32[16,128], index: 4, kind: output, shape index: {2}]  }
   0x1   :  { %148 = vmatprep.subr.bf16.mxu0 %v170_v0  ;;  %v164_v1 = vld [vmem:[%s233_s1 + $0x20] ss:$0 sps:$4 sm:$0xff]   ;;  %158 = vmatprep.mubr.msk.bf16.mxu0 %vm171_vm1, %v170_v0  ;;  %v165_v3 = vld [vmem:[%s233_s1 + $0x18] sm:$0xff]   ;;  %v166_v4 = vld [vmem:[%s233_s1 + $0x10] sm:$0xff]  }
   0x2   :  { %v64_v2 = vsel %vm62_vm0, %v164_v1, 0  ;;  %v167_v5 = vld [vmem:[%s233_s1 + $0x8] sm:$0xff]   ;;  %v168_v6 = vld [vmem:[%s233_s1] sm:$0xff]  }
   0x3   :  { %149 = vmatpush3.bf16.msra.mxu0 %v64_v2  ;;  %v169_v7 = vld [vmem:[%s234_s0] sm:$0xff]  }
   0x4   :  { %150 = vmatprep.subr.bf16.mxu0 %v170_v0 }
   0x7   :  { %151 = vmatpush3.bf16.msra.mxu0 %v165_v3 }
   0x8   :  { %152 = vmatprep.subr.bf16.mxu0 %v170_v0 }
   0xb   :  { %153 = vmatpush3.bf16.msra.mxu0 %v166_v4 }
   0xc   :  { %154 = vmatprep.subr.bf16.mxu0 %v170_v0 }
   0xf   :  { %155 = vmatpush3.bf16.msra.mxu0 %v167_v5 }
  0x10   :  { %156 = vmatprep.subr.bf16.mxu0 %v170_v0 }
  0x13   :  { %157 = vmatpush3.bf16.msra.mxu0 %v168_v6 }
  0x16   :  { %159 = vmatmul.mubr.msk.bf16.vlgmr.msra.gmra.mxu0 %vm58_vm2, %v169_v7 }
  0xd6   :  { %v100_v8 = vpop.f32.mrf.mxu0 }
  0xd7   :  { %107 = vst [vmem:[%s235_s2] sm:$0xff] %v100_v8  ;;  %109 = vadd.xlane.f32.xlu0 %v100_v8  ;;  %v115_v9 = vmul.f32 %v100_v8, %v100_v8 }
  0xd8   :  { %v160_v10 = vpop.f32.mrf.mxu0 }
  0xd9   :  { %117 = vadd.xlane.f32.xlu1 %v115_v9 }
  0xda   :  { %v103_v11 = vpop.f32.mrf.mxu0 }
  0xdb   :  { %108 = vst [vmem:[%s235_s2 + $0x8] sm:$0xff] %v103_v11  ;;  %111 = vadd.xlane.f32.xlu0 %v103_v11  ;;  %v116_v12 = vmul.f32 %v103_v11, %v103_v11 }
  0xdc   :  { %v161_v13 = vpop.f32.mrf.mxu0 }
  0xdd   :  { %119 = vadd.xlane.f32.xlu1 %v116_v12 }
 0x160   :  { %v110_v14 = vpop.xlane.xlu0 %109 }
 0x161   :  { %113 = vst [vmem:[%s236_s3] sm:$0xff] %v110_v14 }
 0x162   :  { %v118_v15 = vpop.xlane.xlu1 %117 }
 0x163   :  { %121 = vst [vmem:[%s237_s4] sm:$0xff] %v118_v15 }
 0x164   :  { %v112_v16 = vpop.xlane.xlu0 %111 }
 0x165   :  { %114 = vst [vmem:[%s236_s3 + $0x8] sm:$0xff] %v112_v16 }
 0x166   :  { %v120_v17 = vpop.xlane.xlu1 %119 }
 0x167   :  { %122 = vst [vmem:[%s237_s4 + $0x8] sm:$0xff] %v120_v17 }

// kernel: skip_architecture.31
= control target key start
LH: loop header
LB: loop body
LE: loop exit
PB: predicated region body
PF: predicated region fallthrough
CT: control target
= control target key end

     0   :  { %v59_v0 = vmov 0   ;;  %s104_s2 = inlined_call_operand.vmem [shape: f32[16,1], index: 2, kind: input, shape index: {}]   ;;  %s105_s1 = inlined_call_operand.vmem [shape: f32[16,1], index: 1, kind: input, shape index: {}]   ;;  %s106_s0 = inlined_call_operand.vmem [shape: f32[16,128], index: 0, kind: input, shape index: {}]   ;;  %s107_s3 = inlined_call_operand.vmem [shape: f32[16,128], index: 3, kind: output, shape index: {}]  }
   0x1   :  { %58 = vset.pattern.permute.xlu1 %v59_v0  ;;  %57 = vset.pattern.permute.xlu0 %v59_v0  ;;  %v30_v1 = vld [vmem:[%s104_s2] sm:$0xff]  ;;  %v31_v3 = vld [vmem:[%s104_s2 + $0x8] sm:$0xff] }
   0x2   :  { %v16_v2 = vld [vmem:[%s105_s1] sm:$0xff]  ;;  %34 = vperm.xlu1 %58, %v30_v1   ;;  %v17_v4 = vld [vmem:[%s105_s1 + $0x8] sm:$0xff] }
   0x3   :  { %20 = vperm.xlu0 %57, %v16_v2   ;;  %v14_v5 = vld [vmem:[%s106_s0] sm:$0xff]  ;;  %v15_v9 = vld [vmem:[%s106_s0 + $0x8] sm:$0xff] }
   0x6   :  { %39 = vperm.xlu1 %58, %v31_v3  }
   0x7   :  { %25 = vperm.xlu0 %57, %v17_v4  }
  0x7d   :  { %v35_v6 = vpop.permute.xlu1 %34 }
  0x7e   :  { %v21_v7 = vpop.permute.xlu0 %20 }
  0x7f   :  { %v28_v8 = vmul.f32 %v21_v7, %v14_v5 }
  0x81   :  { %v42_v10 = vadd.f32 %v35_v6, %v28_v8  ;;  %v40_v14 = vpop.permute.xlu1 %39 }
  0x82   :  { %v26_v11 = vpop.permute.xlu0 %25 }
  0x83   :  { %vm44_vm0 = vcmp.ge.f32.partialorder %v42_v10, 0.0  ;;  %v46_v12 = vmul.f32 0.2, %v42_v10  ;;  %v29_v13 = vmul.f32 %v26_v11, %v15_v9 }
  0x85   :  { %v48_v15 = vsel %vm44_vm0, %v42_v10, %v46_v12  ;;  %v43_v16 = vadd.f32 %v40_v14, %v29_v13 }
  0x86   :  { %50 = vst [vmem:[%s107_s3] sm:$0xff] %v48_v15 }
  0x87   :  { %vm45_vm1 = vcmp.ge.f32.partialorder %v43_v16, 0.0  ;;  %v47_v17 = vmul.f32 0.2, %v43_v16 }
  0x89   :  { %v49_v18 = vsel %vm45_vm1, %v43_v16, %v47_v17 }
  0x8a   :  { %51 = vst [vmem:[%s107_s3 + $0x8] sm:$0xff] %v49_v18 }

// kernel: mul.46
= control target key start
LH: loop header
LB: loop body
LE: loop exit
PB: predicated region body
PF: predicated region fallthrough
CT: control target
= control target key end

     0   :  { %s34_s0 = inlined_call_operand.vmem [shape: f32[16], index: 0, kind: input, shape index: {}]   ;;  %s35_s1 = inlined_call_operand.vmem [shape: f32[16], index: 1, kind: input, shape index: {}]   ;;  %s36_s2 = inlined_call_operand.vmem [shape: f32[16], index: 2, kind: output, shape index: {}]  }
   0x1   :  { %v3_v0 = vld [vmem:[%s34_s0] sm:$0x1] }
   0x2   :  { %v4_v1 = vld [vmem:[%s35_s1] sm:$0x1] }
   0x3   :  { %v7_v2 = vmul.f32 %v4_v1, %v3_v0 }
   0x5   :  { %9 = vst [vmem:[%s36_s2] sm:$0x1] %v7_v2 }

// kernel: skip_architecture.36
= control target key start
LH: loop header
LB: loop body
LE: loop exit
PB: predicated region body
PF: predicated region fallthrough
CT: control target
= control target key end

     0   :  { %s67_s0 = inlined_call_operand.vmem [shape: f32[16,128], index: 0, kind: input, shape index: {}]   ;;  %s68_s1 = inlined_call_operand.vmem [shape: f32[16,128], index: 1, kind: output, shape index: {0}]   ;;  %s69_s2 = inlined_call_operand.vmem [shape: f32[16,128], index: 2, kind: output, shape index: {1}]  }
   0x1   :  { %v10_v0 = vld [vmem:[%s67_s0] sm:$0xff]  ;;  %v11_v1 = vld [vmem:[%s67_s0 + $0x8] sm:$0xff] }
   0x2   :  { %12 = vadd.xlane.f32.xlu0 %v10_v0  ;;  %v18_v2 = vmul.f32 %v10_v0, %v10_v0  ;;  %v19_v3 = vmul.f32 %v11_v1, %v11_v1 }
   0x4   :  { %20 = vadd.xlane.f32.xlu1 %v18_v2 }
   0x6   :  { %14 = vadd.xlane.f32.xlu0 %v11_v1 }
   0x8   :  { %22 = vadd.xlane.f32.xlu1 %v19_v3 }
  0x8b   :  { %v13_v4 = vpop.xlane.xlu0 %12 }
  0x8c   :  { %16 = vst [vmem:[%s68_s1] sm:$0xff] %v13_v4 }
  0x8d   :  { %v21_v5 = vpop.xlane.xlu1 %20 }
  0x8e   :  { %24 = vst [vmem:[%s69_s2] sm:$0xff] %v21_v5 }
  0x8f   :  { %v15_v6 = vpop.xlane.xlu0 %14 }
  0x90   :  { %17 = vst [vmem:[%s68_s1 + $0x8] sm:$0xff] %v15_v6 }
  0x91   :  { %v23_v7 = vpop.xlane.xlu1 %22 }
  0x92   :  { %25 = vst [vmem:[%s69_s2 + $0x8] sm:$0xff] %v23_v7 }

// kernel: skip_architecture.34
= control target key start
LH: loop header
LB: loop body
LE: loop exit
PB: predicated region body
PF: predicated region fallthrough
CT: control target
= control target key end

     0   :  { %v118_v0 = vmov 0.0   ;;  %vm119_vm0 = vmmov 0   ;;  %vm30_vm1 = vcmask 130048   ;;  %s169_s1 = inlined_call_operand.vmem [shape: bf16[16,128], index: 1, kind: input, shape index: {}]   ;;  %s170_s0 = inlined_call_operand.vmem [shape: bf16[16,16], index: 0, kind: input, shape index: {}]   ;;  %s171_s2 = inlined_call_operand.vmem [shape: f32[16,128], index: 2, kind: output, shape index: {0}]   ;;  %s172_s3 = inlined_call_operand.vmem [shape: f32[16,128], index: 3, kind: output, shape index: {1}]   ;;  %s173_s4 = inlined_call_operand.vmem [shape: f32[16,128], index: 4, kind: output, shape index: {2}]  }
   0x1   :  { %108 = vmatprep.subr.bf16.mxu0 %v118_v0  ;;  %v116_v1 = vld [vmem:[%s169_s1] sm:$0xff]   ;;  %110 = vmatprep.mubr.msk.bf16.mxu0 %vm119_vm0, %v118_v0 }
   0x2   :  { %v117_v2 = vld [vmem:[%s170_s0] sm:$0xff]   ;;  %109 = vmatpush3.bf16.msra.mxu0 %v116_v1 }
   0x5   :  { %111 = vmatmul.mubr.msk.bf16.vlgmr.msra.gmra.mxu0 %vm30_vm1, %v117_v2 }
  0xc5   :  { %v68_v3 = vpop.f32.mrf.mxu0 }
  0xc6   :  { %75 = vst [vmem:[%s171_s2] sm:$0xff] %v68_v3  ;;  %77 = vadd.xlane.f32.xlu0 %v68_v3  ;;  %v83_v4 = vmul.f32 %v68_v3, %v68_v3 }
  0xc7   :  { %v112_v5 = vpop.f32.mrf.mxu0 }
  0xc8   :  { %85 = vadd.xlane.f32.xlu1 %v83_v4 }
  0xc9   :  { %v71_v6 = vpop.f32.mrf.mxu0 }
  0xca   :  { %76 = vst [vmem:[%s171_s2 + $0x8] sm:$0xff] %v71_v6  ;;  %79 = vadd.xlane.f32.xlu0 %v71_v6  ;;  %v84_v7 = vmul.f32 %v71_v6, %v71_v6 }
  0xcb   :  { %v113_v8 = vpop.f32.mrf.mxu0 }
  0xcc   :  { %87 = vadd.xlane.f32.xlu1 %v84_v7 }
 0x14f   :  { %v78_v9 = vpop.xlane.xlu0 %77 }
 0x150   :  { %81 = vst [vmem:[%s172_s3] sm:$0xff] %v78_v9 }
 0x151   :  { %v86_v10 = vpop.xlane.xlu1 %85 }
 0x152   :  { %89 = vst [vmem:[%s173_s4] sm:$0xff] %v86_v10 }
 0x153   :  { %v80_v11 = vpop.xlane.xlu0 %79 }
 0x154   :  { %82 = vst [vmem:[%s172_s3 + $0x8] sm:$0xff] %v80_v11 }
 0x155   :  { %v88_v12 = vpop.xlane.xlu1 %87 }
 0x156   :  { %90 = vst [vmem:[%s173_s4 + $0x8] sm:$0xff] %v88_v12 }

// kernel: skip_architecture.32
= control target key start
LH: loop header
LB: loop body
LE: loop exit
PB: predicated region body
PF: predicated region fallthrough
CT: control target
= control target key end

     0   :  { %v196_v0 = vmov 0   ;;  %vm98_vm0 = vcmask 130048   ;;  %s273_s1 = inlined_call_operand.vmem [shape: bf16[144,128], index: 1, kind: input, shape index: {}]   ;;  %s274_s0 = inlined_call_operand.vmem [shape: bf16[16,144], index: 0, kind: input, shape index: {}]   ;;  %s275_s2 = inlined_call_operand.vmem [shape: f32[16,128], index: 2, kind: output, shape index: {0}]   ;;  %s276_s3 = inlined_call_operand.vmem [shape: f32[16,128], index: 3, kind: output, shape index: {1}]   ;;  %s277_s4 = inlined_call_operand.vmem [shape: f32[16,128], index: 4, kind: output, shape index: {2}]  }
   0x1   :  { %102 = vmatprep.subr.bf16.mxu0 %v196_v0  ;;  %v184_v1 = vld [vmem:[%s273_s1 + $0x38] sm:$0xff]   ;;  %v185_v2 = vld [vmem:[%s273_s1 + $0x30] sm:$0xff]   ;;  %v186_v3 = vld [vmem:[%s273_s1 + $0x28] sm:$0xff]  }
   0x2   :  { %103 = vmatpush1.bf16.msra.mxu0 %v184_v1  ;;  %v187_v4 = vld [vmem:[%s273_s1 + $0x20] sm:$0xff]   ;;  %v188_v6 = vld [vmem:[%s273_s1 + $0x18] sm:$0xff]   ;;  %v189_v7 = vld [vmem:[%s273_s1 + $0x10] sm:$0xff]  }
   0x3   :  { %104 = vmatprep.subr.bf16.mxu0 %v196_v0  ;;  %v195_v5 = vld [vmem:[%s274_s0 + $0x4] ss:$8 sps:$4 sm:$0xff]   ;;  %v193_v11 = vld [vmem:[%s274_s0] ss:$8 sps:$4 sm:$0xff]  }
   0x4   :  { %182 = vmatprep.mubr.msk.bf16.mxu0 %vm98_vm0, %v195_v5  ;;  %v190_v8 = vld [vmem:[%s273_s1 + $0x8] sm:$0xff]   ;;  %v191_v9 = vld [vmem:[%s273_s1] sm:$0xff]  }
   0x5   :  { %v192_v10 = vld [vmem:[%s273_s1 + $0x40] sm:$0xff]  }
   0x6   :  { %105 = vmatpush1.bf16.msra.mxu0 %v185_v2 }
   0x7   :  { %106 = vmatprep.subr.bf16.mxu0 %v196_v0 }
   0xa   :  { %107 = vmatpush1.bf16.msra.mxu0 %v186_v3 }
   0xb   :  { %108 = vmatprep.subr.bf16.mxu0 %v196_v0 }
   0xe   :  { %109 = vmatpush1.bf16.msra.mxu0 %v187_v4 }
   0xf   :  { %110 = vmatprep.subr.bf16.mxu0 %v196_v0 }
  0x12   :  { %111 = vmatpush1.bf16.msra.mxu0 %v188_v6 }
  0x13   :  { %112 = vmatprep.subr.bf16.mxu0 %v196_v0 }
  0x16   :  { %113 = vmatpush1.bf16.msra.mxu0 %v189_v7 }
  0x17   :  { %114 = vmatprep.subr.bf16.mxu0 %v196_v0 }
  0x1a   :  { %115 = vmatpush1.bf16.msra.mxu0 %v190_v8 }
  0x1b   :  { %116 = vmatprep.subr.bf16.mxu0 %v196_v0 }
  0x1e   :  { %117 = vmatpush1.bf16.msra.mxu0 %v191_v9 }
  0x1f   :  { %132 = vmatprep.subr.bf16.mxu0 %v196_v0 }
  0x22   :  { %133 = vmatpush2.bf16.msra.mxu0 %v192_v10 }
  0x25   :  { %135 = vmatmul.mubr.bf16.vlgmr.msra.gmra.mxu0 %v193_v11 }
  0xe5   :  { %v136_v12 = vpop.f32.mrf.mxu0 }
  0xe6   :  { %143 = vst [vmem:[%s275_s2] sm:$0xff] %v136_v12  ;;  %145 = vadd.xlane.f32.xlu0 %v136_v12  ;;  %v151_v13 = vmul.f32 %v136_v12, %v136_v12 }
  0xe7   :  { %v138_v14 = vpop.f32.mrf.mxu0 }
  0xe8   :  { %153 = vadd.xlane.f32.xlu1 %v151_v13 }
  0xe9   :  { %v139_v15 = vpop.f32.mrf.mxu0 }
  0xea   :  { %144 = vst [vmem:[%s275_s2 + $0x8] sm:$0xff] %v139_v15  ;;  %147 = vadd.xlane.f32.xlu0 %v139_v15  ;;  %v152_v16 = vmul.f32 %v139_v15, %v139_v15 }
  0xeb   :  { %v141_v17 = vpop.f32.mrf.mxu0 }
  0xec   :  { %155 = vadd.xlane.f32.xlu1 %v152_v16 }
 0x16f   :  { %v146_v18 = vpop.xlane.xlu0 %145 }
 0x170   :  { %149 = vst [vmem:[%s276_s3] sm:$0xff] %v146_v18 }
 0x171   :  { %v154_v19 = vpop.xlane.xlu1 %153 }
 0x172   :  { %157 = vst [vmem:[%s277_s4] sm:$0xff] %v154_v19 }
 0x173   :  { %v148_v20 = vpop.xlane.xlu0 %147 }
 0x174   :  { %150 = vst [vmem:[%s276_s3 + $0x8] sm:$0xff] %v148_v20 }
 0x175   :  { %v156_v21 = vpop.xlane.xlu1 %155 }
 0x176   :  { %158 = vst [vmem:[%s277_s4 + $0x8] sm:$0xff] %v156_v21 }

// kernel: skip_architecture.45
= control target key start
LH: loop header
LB: loop body
LE: loop exit
PB: predicated region body
PF: predicated region fallthrough
CT: control target
= control target key end

     0   :  { %vm21_vm0 = vcmask 1043456   ;;  %v96_v0 = vmov 0.0   ;;  %vm97_vm1 = vmmov 0   ;;  %vm17_vm2 = vcmask 64512   ;;  %s138_s1 = inlined_call_operand.vmem [shape: bf16[8,128], index: 1, kind: input, shape index: {}]   ;;  %s139_s0 = inlined_call_operand.vmem [shape: bf16[8,8], index: 0, kind: input, shape index: {}]   ;;  %s140_s2 = inlined_call_operand.vmem [shape: f32[8,128], index: 2, kind: output, shape index: {0}]   ;;  %s141_s3 = inlined_call_operand.vmem [shape: f32[8,128], index: 3, kind: output, shape index: {1}]   ;;  %s142_s4 = inlined_call_operand.vmem [shape: f32[8,128], index: 4, kind: output, shape index: {2}]  }
   0x1   :  { %88 = vmatprep.subr.bf16.mxu0 %v96_v0  ;;  %v16_v1 = vld [vmem:[%s138_s1] sm:$0xf]  ;;  %90 = vmatprep.mubr.msk.bf16.mxu0 %vm97_vm1, %v96_v0 }
   0x2   :  { %v23_v2 = vsel %vm21_vm0, %v16_v1, 0  ;;  %v15_v3 = vld [vmem:[%s139_s0] sm:$0xf] }
   0x3   :  { %89 = vmatpush3.bf16.msra.mxu0 %v23_v2 }
   0x6   :  { %91 = vmatmul.mubr.msk.bf16.vlgmr.msra.gmra.mxu0 %vm17_vm2, %v15_v3 }
  0xc6   :  { %v59_v4 = vpop.f32.mrf.mxu0 }
  0xc7   :  { %65 = vst [vmem:[%s140_s2] sm:$0xff] %v59_v4  ;;  %66 = vadd.xlane.f32.xlu0 %v59_v4  ;;  %v69_v6 = vmul.f32 %v59_v4, %v59_v4 }
  0xc8   :  { %v92_v5 = vpop.f32.mrf.mxu0 }
  0xca   :  { %v62_v7 = vpop.f32.mrf.mxu0 }
  0xcb   :  { %70 = vadd.xlane.f32.xlu0 %v69_v6 }
  0xcc   :  { %v93_v8 = vpop.f32.mrf.mxu0 }
 0x150   :  { %v67_v9 = vpop.xlane.xlu0 %66 }
 0x151   :  { %68 = vst [vmem:[%s141_s3] sm:$0xff] %v67_v9 }
 0x154   :  { %v71_v10 = vpop.xlane.xlu0 %70 }
 0x155   :  { %72 = vst [vmem:[%s142_s4] sm:$0xff] %v71_v10 }

// kernel: skip_architecture.43
= control target key start
LH: loop header
LB: loop body
LE: loop exit
PB: predicated region body
PF: predicated region fallthrough
CT: control target
= control target key end

     0   :  { %v212_v0 = vmov 0   ;;  %vm114_vm0 = vcmask 424960   ;;  %vm118_vm1 = vcmask 1041408   ;;  %s286_s1 = inlined_call_operand.vmem [shape: bf16[180,128], index: 1, kind: input, shape index: {}]   ;;  %s287_s0 = inlined_call_operand.vmem [shape: bf16[8,180], index: 0, kind: input, shape index: {}]   ;;  %s288_s2 = inlined_call_operand.vmem [shape: f32[8,128], index: 2, kind: output, shape index: {0}]   ;;  %s289_s3 = inlined_call_operand.vmem [shape: f32[8,128], index: 3, kind: output, shape index: {1}]   ;;  %s290_s4 = inlined_call_operand.vmem [shape: f32[8,128], index: 4, kind: output, shape index: {2}]  }
   0x1   :  { %122 = vmatprep.subr.bf16.mxu0 %v212_v0  ;;  %v198_v1 = vld [vmem:[%s286_s1 + $0x38] sm:$0xff]   ;;  %v199_v2 = vld [vmem:[%s286_s1 + $0x30] sm:$0xff]   ;;  %v200_v3 = vld [vmem:[%s286_s1 + $0x28] sm:$0xff]  }
   0x2   :  { %123 = vmatpush1.bf16.msra.mxu0 %v198_v1  ;;  %v201_v4 = vld [vmem:[%s286_s1 + $0x20] sm:$0xff]   ;;  %v202_v7 = vld [vmem:[%s286_s1 + $0x18] sm:$0xff]   ;;  %v203_v8 = vld [vmem:[%s286_s1 + $0x10] sm:$0xff]  }
   0x3   :  { %124 = vmatprep.subr.bf16.mxu0 %v212_v0  ;;  %v15_v5 = vld [vmem:[%s287_s0] sm:$0xff]  ;;  %v204_v9 = vld [vmem:[%s286_s1 + $0x8] sm:$0xff]   ;;  %v206_v11 = vld [vmem:[%s286_s1 + $0x58] ss:$0 sps:$4 sm:$0x33]  }
   0x4   :  { %v183_v6 = vcombine.high %v15_v5, %v15_v5  ;;  %v205_v10 = vld [vmem:[%s286_s1] sm:$0xff]   ;;  %v120_v12 = vsel %vm118_vm1, %v206_v11, 0  ;;  %v207_v13 = vld [vmem:[%s286_s1 + $0x50] sm:$0xff]   ;;  %v208_v14 = vld [vmem:[%s286_s1 + $0x48] sm:$0xff]   ;;  %v182_v16 = vcombine.low %v15_v5, %v15_v5 }
   0x5   :  { %v209_v15 = vld [vmem:[%s286_s1 + $0x40] sm:$0xff]  }
   0x6   :  { %125 = vmatpush1.bf16.msra.mxu0 %v199_v2  ;;  %196 = vmatprep.mubr.msk.bf16.mxu0 %vm114_vm0, %v183_v6 }
   0x7   :  { %126 = vmatprep.subr.bf16.mxu0 %v212_v0 }
   0xa   :  { %127 = vmatpush1.bf16.msra.mxu0 %v200_v3 }
   0xb   :  { %128 = vmatprep.subr.bf16.mxu0 %v212_v0 }
   0xe   :  { %129 = vmatpush1.bf16.msra.mxu0 %v201_v4 }
   0xf   :  { %130 = vmatprep.subr.bf16.mxu0 %v212_v0 }
  0x12   :  { %131 = vmatpush1.bf16.msra.mxu0 %v202_v7 }
  0x13   :  { %132 = vmatprep.subr.bf16.mxu0 %v212_v0 }
  0x16   :  { %133 = vmatpush1.bf16.msra.mxu0 %v203_v8 }
  0x17   :  { %134 = vmatprep.subr.bf16.mxu0 %v212_v0 }
  0x1a   :  { %135 = vmatpush1.bf16.msra.mxu0 %v204_v9 }
  0x1b   :  { %136 = vmatprep.subr.bf16.mxu0 %v212_v0 }
  0x1e   :  { %137 = vmatpush1.bf16.msra.mxu0 %v205_v10 }
  0x1f   :  { %146 = vmatprep.subr.bf16.mxu0 %v212_v0 }
  0x22   :  { %147 = vmatpush2.bf16.msra.mxu0 %v120_v12 }
  0x23   :  { %148 = vmatprep.subr.bf16.mxu0 %v212_v0 }
  0x26   :  { %149 = vmatpush2.bf16.msra.mxu0 %v207_v13 }
  0x27   :  { %150 = vmatprep.subr.bf16.mxu0 %v212_v0 }
  0x2a   :  { %151 = vmatpush2.bf16.msra.mxu0 %v208_v14 }
  0x2b   :  { %152 = vmatprep.subr.bf16.mxu0 %v212_v0 }
  0x2e   :  { %153 = vmatpush2.bf16.msra.mxu0 %v209_v15 }
  0x31   :  { %155 = vmatmul.mubr.bf16.vlgmr.msra.gmra.mxu0 %v182_v16 }
  0xf1   :  { %v156_v17 = vpop.f32.mrf.mxu0 }
  0xf2   :  { %162 = vst [vmem:[%s288_s2] sm:$0xff] %v156_v17  ;;  %163 = vadd.xlane.f32.xlu0 %v156_v17  ;;  %v166_v19 = vmul.f32 %v156_v17, %v156_v17 }
  0xf3   :  { %v158_v18 = vpop.f32.mrf.mxu0 }
  0xf5   :  { %v159_v20 = vpop.f32.mrf.mxu0 }
  0xf6   :  { %167 = vadd.xlane.f32.xlu0 %v166_v19 }
  0xf7   :  { %v160_v21 = vpop.f32.mrf.mxu0 }
 0x17b   :  { %v164_v22 = vpop.xlane.xlu0 %163 }
 0x17c   :  { %165 = vst [vmem:[%s289_s3] sm:$0xff] %v164_v22 }
 0x17f   :  { %v168_v23 = vpop.xlane.xlu0 %167 }
 0x180   :  { %169 = vst [vmem:[%s290_s4] sm:$0xff] %v168_v23 }

// kernel: skip_architecture.47
= control target key start
LH: loop header
LB: loop body
LE: loop exit
PB: predicated region body
PF: predicated region fallthrough
CT: control target
= control target key end

     0   :  { %vm38_vm0 = vcmask 1043456   ;;  %v205_v2 = vmov 0   ;;  %vm34_vm1 = vcmask 64512   ;;  %s248_s1 = inlined_call_operand.vmem [shape: bf16[8,512], index: 1, kind: input, shape index: {}]   ;;  %s249_s2 = inlined_call_operand.vmem [shape: f32[3,1], index: 2, kind: input, shape index: {}]   ;;  %s250_s0 = inlined_call_operand.vmem [shape: bf16[3,8], index: 0, kind: input, shape index: {}]   ;;  %s251_s3 = inlined_call_operand.vmem [shape: f32[3,512], index: 3, kind: output, shape index: {}]  }
   0x1   :  { %v16_v0 = vld [vmem:[%s248_s1] sm:$0xff]  ;;  %v17_v1 = vld [vmem:[%s248_s1 + $0x8] sm:$0xff]  ;;  %83 = vmatprep.mubr.bf16.mxu0 %v205_v2  ;;  %124 = vmatprep.mubr.bf16.mxu1 %v205_v2 }
   0x2   :  { %v172_v3 = vcombine.high %v16_v0, %v16_v0  ;;  %v174_v4 = vcombine.high %v17_v1, %v17_v1  ;;  %v171_v5 = vcombine.low %v16_v0, %v16_v0  ;;  %v173_v6 = vcombine.low %v17_v1, %v17_v1  ;;  %184 = vset.pattern.permute.xlu0 %v205_v2  ;;  %v18_v7 = vld [vmem:[%s249_s2] sm:$0x7] }
   0x3   :  { %21 = vperm.xlu0 %184, %v18_v7   ;;  %v15_v10 = vld [vmem:[%s250_s0] sm:$0x3] }
   0x4   :  { %175 = vmatprep.subr.msk.bf16.mxu0 %vm38_vm0, %v172_v3  ;;  %177 = vmatprep.subr.msk.bf16.mxu1 %vm38_vm0, %v174_v4  ;;  %v40_v8 = vsel %vm38_vm0, %v171_v5, 0  ;;  %v46_v9 = vsel %vm38_vm0, %v173_v6, 0 }
   0x5   :  { %66 = vmatpush1.bf16.msra.mxu0 %v40_v8  ;;  %107 = vmatpush1.bf16.msra.mxu1 %v46_v9 }
   0x8   :  { %176 = vmatmul.mubr.msk.bf16.vlgmr.msra.gmra.mxu0 %vm34_vm1, %v15_v10  ;;  %178 = vmatmul.mubr.msk.bf16.vlgmr.msra.gmra.mxu1 %vm34_vm1, %v15_v10 }
  0x7e   :  { %v22_v11 = vpop.permute.xlu0 %21 }
  0xc8   :  { %v85_v12 = vpop.f32.mrf.mxu0  ;;  %v126_v13 = vpop.f32.mrf.mxu1 }
  0xc9   :  { %v86_v14 = vadd.f32 %v85_v12, %v22_v11  ;;  %v127_v15 = vadd.f32 %v126_v13, %v22_v11 }
  0xca   :  { %v87_v16 = vpop.f32.mrf.mxu0  ;;  %v128_v17 = vpop.f32.mrf.mxu1 }
  0xcb   :  { %v179_v18 = vmul.f32 -1.442695, %v86_v14  ;;  %v181_v19 = vmul.f32 -1.442695, %v127_v15  ;;  %v88_v20 = vadd.f32 %v87_v16, %v22_v11  ;;  %v129_v21 = vadd.f32 %v128_v17, %v22_v11 }
  0xcc   :  { %v89_v22 = vpop.f32.mrf.mxu0  ;;  %v130_v23 = vpop.f32.mrf.mxu1 }
  0xcd   :  { %189 = vpow2.f32 %v179_v18  ;;  %v180_v24 = vmul.f32 -1.442695, %v88_v20  ;;  %v182_v25 = vmul.f32 -1.442695, %v129_v21 }
  0xce   :  { %191 = vpow2.f32 %v181_v19  ;;  %v90_v26 = vpop.f32.mrf.mxu0  ;;  %v131_v27 = vpop.f32.mrf.mxu1 }
  0xcf   :  { %193 = vpow2.f32 %v180_v24 }
  0xd0   :  { %195 = vpow2.f32 %v182_v25 }
  0xda   :  { %v190_v28 = vpop.eup %189 }
  0xdb   :  { %v192_v29 = vpop.eup %191  ;;  %v145_v30 = vadd.f32 1.0, %v190_v28 }
  0xdc   :  { %v194_v31 = vpop.eup %193  ;;  %v147_v32 = vadd.f32 1.0, %v192_v29 }
  0xdd   :  { %v196_v33 = vpop.eup %195  ;;  %197 = vrcp.f32 %v145_v30  ;;  %v146_v34 = vadd.f32 1.0, %v194_v31 }
  0xde   :  { %199 = vrcp.f32 %v147_v32  ;;  %v148_v35 = vadd.f32 1.0, %v196_v33 }
  0xdf   :  { %201 = vrcp.f32 %v146_v34 }
  0xe0   :  { %203 = vrcp.f32 %v148_v35 }
  0xea   :  { %v198_v36 = vpop.eup %197 }
  0xeb   :  { %v200_v37 = vpop.eup %199 }
  0xec   :  { %v202_v38 = vpop.eup %201 }
  0xed   :  { %v204_v39 = vpop.eup %203  ;;  %v161_v40 = vcombine.low %v198_v36, %v202_v38 }
  0xee   :  { %v162_v41 = vcombine.low %v200_v37, %v204_v39 }
  0xef   :  { %165 = vst [vmem:[%s251_s3] sm:$0x77] %v161_v40 }
  0xf0   :  { %166 = vst [vmem:[%s251_s3 + $0x8] sm:$0x77] %v162_v41 }

</bundles_post_ra>
